<compile_context>
chip_gen: v7x
topology: tpu7x:2x2x1
jax: 0.10.0
libtpu: 0.0.40
codegen_flags: <defaults>
</compile_context>

<pallas_src>
import functools

import jax
import jax.numpy as jnp
from jax.experimental import pallas as pl
from jax.experimental.pallas import tpu as pltpu

_VMEM_LIMIT_BYTES = 48 * 1024 * 1024   # leave headroom on v7x (64 MiB physical)


def _make_pass1_kernel(*, B, Bp, C, T, L, TL, shifts, halo_l):
    """conv -> pointwise -> FiLM -> per-batch partial gLN stats, per lane tile."""

    def kernel(x_ref, halo_ref, dww_ref, dwb_ref, pww_ref, pwb_ref, gb_ref,
               y_ref, st_ref):
        i = pl.program_id(0)
        x = x_ref[...]                                         # (C, TL) f32
        halo = halo_ref[0]                                     # (C, HW) f32

        lane_loc = jax.lax.broadcasted_iota(jnp.int32, (1, TL), 1)
        lane = i * TL + lane_loc                               # global lane idx

        # batch id / time position without integer div (B is small & static).
        bid = jnp.zeros_like(lane)
        for b in range(1, B):
            bid = bid + (lane >= b * T).astype(jnp.int32)
        tpos = lane - bid * T
        valid = lane < L

        # ---- depthwise K-tap conv: in-tile roll (XLU) + cross-tile halo fixup
        #      + zero-padding masks at batch/time boundaries.
        acc = jnp.zeros(x.shape, jnp.float32)
        for k, s in enumerate(shifts):
            wk = dww_ref[k]                                    # (C, 1) broadcast
            if s == 0:
                tap = x
            else:
                tap = pltpu.roll(x, shift=(-s) % TL, axis=1)
                if s > 0:                                      # fix wrapped right edge
                    for j in range(s):
                        col = halo[:, halo_l + j:halo_l + j + 1]
                        tap = jnp.where(lane_loc == (TL - s + j), col, tap)
                else:                                          # fix wrapped left edge
                    for j in range(-s):
                        col = halo[:, halo_l + s + j:halo_l + s + j + 1]
                        tap = jnp.where(lane_loc == j, col, tap)
                tap_t = tpos + s
                tap = jnp.where((tap_t >= 0) & (tap_t < T), tap, 0.0)
            acc = acc + tap * wk
        acc = acc + dwb_ref[...]

        # ---- pointwise 1x1 conv on the MXU (bf16 operands, f32 accumulate).
        z = jnp.dot(pww_ref[...], acc.astype(jnp.bfloat16),
                    preferred_element_type=jnp.float32) + pwb_ref[...]

        # ---- FiLM: single fused (2C, Bp) @ (Bp, TL) bf16 matmul (gamma;beta).
        brow = jax.lax.broadcasted_iota(jnp.int32, (Bp, TL), 0)
        onehot_bt = jnp.where((brow == bid) & valid, 1.0, 0.0).astype(jnp.bfloat16)
        fmap = jnp.dot(gb_ref[...], onehot_bt,
                       preferred_element_type=jnp.float32)      # (2C, TL) f32
        y = fmap[:C] * z + fmap[C:]

        # ---- per-batch partial gLN stats (sum, sum-of-squares) for this tile.
        # Column sums stay f32 (XLU); the per-batch masking/contraction runs on
        # the MXU against a lane->batch one-hot built directly in (TL, Bp).
        colsum = jnp.sum(y, axis=0, keepdims=True)              # (1, TL)
        colsq = jnp.sum(y * y, axis=0, keepdims=True)           # (1, TL)
        cols = jnp.concatenate([colsum, colsq], axis=0)         # (2, TL)
        lcol = i * TL + jax.lax.broadcasted_iota(jnp.int32, (TL, Bp), 0)
        bcol = jax.lax.broadcasted_iota(jnp.int32, (TL, Bp), 1)
        onehot_tb = jnp.where((lcol >= bcol * T) & (lcol < (bcol + 1) * T)
                              & (lcol < L), 1.0, 0.0)            # (TL, Bp) f32
        st_ref[0] = jnp.dot(cols, onehot_tb, preferred_element_type=jnp.float32)

        # y intermediate in bf16 (halves HBM traffic for the inter-pass stream).
        y_ref[...] = y.astype(y_ref.dtype)

    return kernel


def _make_pass2_kernel(*, B, Bp, C, T, L, TL, dual_head):
    """normalize (gLN) + affine + residual add + skip 1x1 conv, per lane tile."""

    def kernel(y_ref, x_ref, nab_ref, lng_ref, lnb_ref, skw_ref, skb_ref,
               skip_ref, *xout_ref):
        i = pl.program_id(0)
        y = y_ref[...].astype(jnp.float32)                      # (C, TL)

        lane = i * TL + jax.lax.broadcasted_iota(jnp.int32, (1, TL), 1)
        bid = jnp.zeros_like(lane)
        for b in range(1, B):
            bid = bid + (lane >= b * T).astype(jnp.int32)
        valid = lane < L
        brow = jax.lax.broadcasted_iota(jnp.int32, (Bp, TL), 0)
        onehot_bt = jnp.where((brow == bid) & valid, 1.0, 0.0)   # (Bp, TL) f32

        # map per-batch (rstd, mean*rstd) onto lanes with one tiny MXU matmul.
        maps = jnp.dot(nab_ref[...], onehot_bt,
                       preferred_element_type=jnp.float32)       # (2, TL)
        y = (y * maps[0:1] - maps[1:2]) * lng_ref[...] + lnb_ref[...]

        x_out = y + x_ref[...]                                   # residual add

        skip_ref[...] = jnp.dot(skw_ref[...], x_out.astype(jnp.bfloat16),
                                preferred_element_type=jnp.float32) + skb_ref[...]
        if dual_head:
            xout_ref[0][...] = x_out

    return kernel


def film_residual_block1d(x, gamma, beta, params, *, kernel_size=3, stride=1,
                          dilation=1, causal=False, dual_head=False,
                          eps=1e-12, lane_tile=None):
    """x: (B, C, T) f32; gamma, beta: (B, C) f32. Returns (output, skip)."""
    assert stride == 1, "stride=1 required for the residual add (module default)"
    B, C, T = x.shape
    S = params["sk_w"].shape[0]
    K = kernel_size
    assert params["pw_w"].shape == (C, C), "residual add needs out_channels == in_channels"
    assert C % 8 == 0, "channels assumed a multiple of 8 (sublane tiling)"

    # "same"-style padding exactly as in the PyTorch module (as static shifts).
    padding = (T - 1) * stride - T + (K - 1) * dilation + 1
    pad_l = padding if causal else padding // 2
    shifts = tuple(k * dilation - pad_l for k in range(K))
    halo_l = max(0, -min(shifts))
    halo_r = max(0, max(shifts))
    HW = max(1, halo_l + halo_r)

    # Lane-folded layout (C, B*T), lane l = b*T + t, tiled along lanes.
    L = B * T
    if lane_tile is None:
        lane_tile = 1024   # TODO(synk): size per generation via pltpu.get_tpu_info()
    L128 = ((L + 127) // 128) * 128
    TL = max(128, (min(int(lane_tile), L128) // 128) * 128)
    Lp = ((L + TL - 1) // TL) * TL
    num_tiles = Lp // TL
    assert max(abs(s) for s in shifts) < TL

    f32, bf16 = jnp.float32, jnp.bfloat16
    x_flat = jnp.transpose(x, (1, 0, 2)).reshape(C, L).astype(f32)
    if Lp != L:
        x_flat = jnp.pad(x_flat, ((0, 0), (0, Lp - L)))

    # Tiny per-tile halo columns (left halo_l cols, then right halo_r cols).
    starts = jnp.arange(num_tiles) * TL
    if halo_l + halo_r:
        hoff = jnp.concatenate([jnp.arange(halo_l) - halo_l, TL + jnp.arange(halo_r)])
    else:
        hoff = jnp.zeros((1,), jnp.int32)
    idx = starts[:, None] + hoff[None, :]                        # (nt, HW)
    ok = (idx >= 0) & (idx < Lp)
    halo = jnp.where(ok[None], x_flat[:, jnp.clip(idx, 0, Lp - 1)], 0.0)
    halo = jnp.transpose(halo, (1, 0, 2))                        # (nt, C, HW)

    # Fused FiLM operand: [gamma; beta] laid out (2C, Bp), bf16 (onehot is exact).
    Bp = ((B + 7) // 8) * 8
    gamma_cb = jnp.zeros((C, Bp), f32).at[:, :B].set(gamma.T.astype(f32))
    beta_cb = jnp.zeros((C, Bp), f32).at[:, :B].set(beta.T.astype(f32))
    gb = jnp.concatenate([gamma_cb, beta_cb], axis=0).astype(bf16)

    dw_w = jnp.transpose(params["dw_w"].astype(f32), (1, 0))[:, :, None]   # (K, C, 1)

    def _full(a):
        nd = a.ndim
        return pl.BlockSpec(a.shape, lambda i, _nd=nd: (0,) * _nd)

    # ---------------- pass 1: conv + FiLM + partial stats -------------------
    args1 = (x_flat, halo, dw_w, params["dw_b"].astype(f32),
             params["pw_w"].astype(bf16), params["pw_b"].astype(f32), gb)
    in_specs1 = [
        pl.BlockSpec((C, TL), lambda i: (0, i)),
        pl.BlockSpec((1, C, HW), lambda i: (i, 0, 0)),
        _full(dw_w), _full(args1[3]), _full(args1[4]), _full(args1[5]), _full(gb),
    ]
    out_shape1 = (jax.ShapeDtypeStruct((C, Lp), bf16),
                  jax.ShapeDtypeStruct((num_tiles, 2, Bp), f32))
    out_specs1 = (pl.BlockSpec((C, TL), lambda i: (0, i)),
                  pl.BlockSpec((1, 2, Bp), lambda i: (i, 0, 0)))

    y_bf16, stats = pl.pallas_call(
        _make_pass1_kernel(B=B, Bp=Bp, C=C, T=T, L=L, TL=TL, shifts=shifts,
                           halo_l=halo_l),
        out_shape=out_shape1,
        grid_spec=pltpu.PrefetchScalarGridSpec(
            num_scalar_prefetch=0, grid=(num_tiles,),
            in_specs=in_specs1, out_specs=out_specs1),
        compiler_params=pltpu.CompilerParams(
            dimension_semantics=("parallel",),
            vmem_limit_bytes=_VMEM_LIMIT_BYTES),
        cost_estimate=pl.CostEstimate(
            flops=2 * C * C * Lp + 2 * K * C * Lp + 4 * C * Bp * Lp + 4 * Bp * Lp,
            transcendentals=0,
            bytes_accessed=C * Lp * 4 + C * Lp * 2 + 4 * C * C),
    )(*args1)

    # ---------------- tiny glue: finalize gLN statistics --------------------
    n = jnp.float32(C * T)
    tot = jnp.sum(stats, axis=0)                                 # (2, Bp)
    mean_b = tot[0] / n
    var_b = jnp.maximum(tot[1] / n - mean_b * mean_b, 0.0)       # clamp 1-pass var
    rstd_b = jax.lax.rsqrt(var_b + eps)
    norm_ab = jnp.stack([rstd_b, mean_b * rstd_b], axis=0)       # (2, Bp)

    # ---------------- pass 2: normalize + residual + skip conv --------------
    args2 = (y_bf16, x_flat, norm_ab,
             params["ln_g"].astype(f32), params["ln_b"].astype(f32),
             params["sk_w"].astype(bf16), params["sk_b"].astype(f32))
    in_specs2 = [
        pl.BlockSpec((C, TL), lambda i: (0, i)),
        pl.BlockSpec((C, TL), lambda i: (0, i)),
        _full(norm_ab), _full(args2[3]), _full(args2[4]), _full(args2[5]),
        _full(args2[6]),
    ]
    out_shape2 = [jax.ShapeDtypeStruct((S, Lp), f32)]
    out_specs2 = [pl.BlockSpec((S, TL), lambda i: (0, i))]
    if dual_head:
        out_shape2.append(jax.ShapeDtypeStruct((C, Lp), f32))
        out_specs2.append(pl.BlockSpec((C, TL), lambda i: (0, i)))

    results = pl.pallas_call(
        _make_pass2_kernel(B=B, Bp=Bp, C=C, T=T, L=L, TL=TL, dual_head=dual_head),
        out_shape=tuple(out_shape2),
        grid_spec=pltpu.PrefetchScalarGridSpec(
            num_scalar_prefetch=0, grid=(num_tiles,),
            in_specs=in_specs2, out_specs=tuple(out_specs2)),
        compiler_params=pltpu.CompilerParams(
            dimension_semantics=("parallel",),
            vmem_limit_bytes=_VMEM_LIMIT_BYTES),
        cost_estimate=pl.CostEstimate(
            flops=2 * S * C * Lp + 4 * Bp * Lp + 4 * C * Lp,
            transcendentals=0,
            bytes_accessed=C * Lp * 2 + C * Lp * 4 + S * Lp * 4),
    )(*args2)

    skip = jnp.transpose(results[0][:, :L].reshape(S, B, T), (1, 0, 2))
    if dual_head:
        out = jnp.transpose(results[1][:, :L].reshape(C, B, T), (1, 0, 2))
        return out, skip
    return None, skip


def _reference(x, gamma, beta, params, *, K=3, dilation=1, eps=1e-12):
    """Pure-JAX f32 reference mirroring the PyTorch forward (verification)."""
    B, C, T = x.shape
    padding = (K - 1) * dilation
    pad_l = padding // 2
    xp = jnp.pad(x, ((0, 0), (0, 0), (pad_l, padding - pad_l)))
    y = jnp.zeros((B, C, T), jnp.float32)
    for k in range(K):
        y = y + xp[:, :, k * dilation:k * dilation + T] * params["dw_w"][None, :, k:k + 1]
    y = y + params["dw_b"][None]
    y = jnp.einsum("oc,bct->bot", params["pw_w"], y) + params["pw_b"][None]
    y = gamma[:, :, None] * y + beta[:, :, None]
    mean = jnp.mean(y, axis=(1, 2), keepdims=True)
    var = jnp.mean((y - mean) ** 2, axis=(1, 2), keepdims=True)
    y = (y - mean) / jnp.sqrt(var + eps)
    y = y * params["ln_g"][None] + params["ln_b"][None]
    x_out = y + x
    skip = jnp.einsum("sc,bct->bst", params["sk_w"], x_out) + params["sk_b"][None]
    return x_out, skip


if __name__ == "__main__":
    # Small shapes chosen to exercise: multiple lane tiles, cross-tile halos,
    # a mid-tile batch boundary, and padded lanes in the last tile.
    B, C, T, S, K = 2, 32, 300, 8, 3   # in_channels == out_channels == C

    key = jax.random.PRNGKey(0)
    ks = jax.random.split(key, 9)
    x = jax.random.normal(ks[0], (B, C, T), jnp.float32)
    gamma = jax.random.normal(ks[1], (B, C), jnp.float32)
    beta = jax.random.normal(ks[2], (B, C), jnp.float32)

    params = {
        "dw_w": 0.1 * jax.random.normal(ks[3], (C, K), jnp.float32),
        "dw_b": 0.1 * jax.random.normal(ks[4], (C, 1), jnp.float32),
        "pw_w": 0.1 * jax.random.normal(ks[5], (C, C), jnp.float32),
        "pw_b": 0.1 * jax.random.normal(ks[6], (C, 1), jnp.float32),
        "ln_g": jnp.ones((C, 1), jnp.float32),
        "ln_b": jnp.zeros((C, 1), jnp.float32),
        "sk_w": 0.1 * jax.random.normal(ks[7], (S, C), jnp.float32),
        "sk_b": 0.1 * jax.random.normal(ks[8], (S, 1), jnp.float32),
    }

    run = jax.jit(functools.partial(film_residual_block1d, kernel_size=K,
                                    dilation=1, causal=False, lane_tile=128),
                  static_argnames=("dual_head",))

    # Default path (dual_head=False): only `skip` is computed / written back.
    output, skip = run(x, gamma, beta, params)
    jax.block_until_ready(skip)
    assert output is None  # matches the PyTorch default (dual_head=False)

    ref_out, ref_skip = _reference(x, gamma, beta, params, K=K)
    # Tolerance sized for bf16 MXU operands / bf16 inter-pass y (f32 accumulate).
    assert jnp.allclose(skip, ref_skip, atol=5e-2, rtol=5e-2), "skip mismatch vs reference"

    # dual_head=True path: also returns x_out; verify it too.
    out2, skip2 = run(x, gamma, beta, params, dual_head=True)
    jax.block_until_ready(skip2)
    assert jnp.allclose(out2, ref_out, atol=5e-2, rtol=5e-2), "output mismatch vs reference"
    assert jnp.allclose(skip2, ref_skip, atol=5e-2, rtol=5e-2), "skip mismatch (dual_head)"

    print("KERNEL_OK")
</pallas_src>

<mosaic_0001>
module attributes {stable_mosaic.version = 11 : i64} {
  func.func @kernel(%arg0: i32, %arg1: memref<32x128xf32, #tpu.memory_space<vmem>>, %arg2: memref<1x32x2xf32, #tpu.memory_space<vmem>>, %arg3: memref<3x32x1xf32, #tpu.memory_space<vmem>>, %arg4: memref<32x1xf32, #tpu.memory_space<vmem>>, %arg5: memref<32x32xbf16, #tpu.memory_space<vmem>>, %arg6: memref<32x1xf32, #tpu.memory_space<vmem>>, %arg7: memref<64x8xbf16, #tpu.memory_space<vmem>>, %arg8: memref<32x128xbf16, #tpu.memory_space<vmem>>, %arg9: memref<1x2x8xf32, #tpu.memory_space<vmem>>) attributes {dimension_semantics = [#tpu.dimension_semantics<parallel>], iteration_bounds = array<i64: 5>, scalar_prefetch = 0 : i64, scratch_operands = 0 : i64, tpu.core_type = #tpu.core_type<tc>, window_params = [{transform_indices = @transform_0, window_bounds = array<i64: 32, 128>}, {transform_indices = @transform_1, window_bounds = array<i64: 1, 32, 2>}, {pipeline_mode = #tpu.pipeline_mode<synchronous>, transform_indices = @transform_2, window_bounds = array<i64: 3, 32, 1>}, {pipeline_mode = #tpu.pipeline_mode<synchronous>, transform_indices = @transform_3, window_bounds = array<i64: 32, 1>}, {pipeline_mode = #tpu.pipeline_mode<synchronous>, transform_indices = @transform_4, window_bounds = array<i64: 32, 32>}, {pipeline_mode = #tpu.pipeline_mode<synchronous>, transform_indices = @transform_5, window_bounds = array<i64: 32, 1>}, {pipeline_mode = #tpu.pipeline_mode<synchronous>, transform_indices = @transform_6, window_bounds = array<i64: 64, 8>}, {transform_indices = @transform_7, window_bounds = array<i64: 32, 128>}, {transform_indices = @transform_8, window_bounds = array<i64: 1, 2, 8>}]} {
    %c0 = arith.constant 0 : index
    %c0_0 = arith.constant 0 : index
    %0 = vector.load %arg1[%c0, %c0_0] : memref<32x128xf32, #tpu.memory_space<vmem>>, vector<32x128xf32>
    %c0_1 = arith.constant 0 : index
    %c0_2 = arith.constant 0 : index
    %c0_3 = arith.constant 0 : index
    %1 = vector.load %arg2[%c0_1, %c0_2, %c0_3] : memref<1x32x2xf32, #tpu.memory_space<vmem>>, vector<1x32x2xf32>
    %2 = vector.shape_cast %1 : vector<1x32x2xf32> to vector<32x2xf32>
    %3 = tpu.iota {dimensions = array<i32: 1>} : vector<1x128xi32>
    %c128_i32 = arith.constant 128 : i32
    %4 = arith.muli %arg0, %c128_i32 : i32
    %5 = vector.broadcast %4 : i32 to vector<1x128xi32>
    %6 = arith.addi %5, %3 : vector<1x128xi32>
    %c0_i32 = arith.constant 0 : i32
    %7 = vector.broadcast %c0_i32 : i32 to vector<1x128xi32>
    %c300_i32 = arith.constant 300 : i32
    %8 = vector.broadcast %c300_i32 : i32 to vector<1x128xi32>
    %9 = arith.cmpi sge, %6, %8 : vector<1x128xi32>
    %10 = arith.extui %9 : vector<1x128xi1> to vector<1x128xi32>
    %11 = arith.addi %7, %10 : vector<1x128xi32>
    %c300_i32_4 = arith.constant 300 : i32
    %12 = vector.broadcast %c300_i32_4 : i32 to vector<1x128xi32>
    %13 = arith.muli %11, %12 : vector<1x128xi32>
    %14 = arith.subi %6, %13 : vector<1x128xi32>
    %c600_i32 = arith.constant 600 : i32
    %15 = vector.broadcast %c600_i32 : i32 to vector<1x128xi32>
    %16 = arith.cmpi slt, %6, %15 : vector<1x128xi32>
    %cst = arith.constant 0.000000e+00 : f32
    %17 = vector.broadcast %cst : f32 to vector<32x128xf32>
    %c0_5 = arith.constant 0 : index
    %c0_6 = arith.constant 0 : index
    %c0_7 = arith.constant 0 : index
    %18 = vector.load %arg3[%c0_5, %c0_6, %c0_7] : memref<3x32x1xf32, #tpu.memory_space<vmem>>, vector<1x32x1xf32>
    %19 = vector.shape_cast %18 : vector<1x32x1xf32> to vector<32x1xf32>
    %c1_i32 = arith.constant 1 : i32
    %20 = tpu.dynamic_rotate %0 by %c1_i32 dim 1 : vector<32x128xf32>, i32 -> vector<32x128xf32>
    %21 = vector.extract_strided_slice %2 {offsets = [0, 0], sizes = [32, 1], strides = [1, 1]} : vector<32x2xf32> to vector<32x1xf32>
    %c0_i32_8 = arith.constant 0 : i32
    %22 = vector.broadcast %c0_i32_8 : i32 to vector<1x128xi32>
    %23 = arith.cmpi eq, %3, %22 : vector<1x128xi32>
    %24 = vector.shape_cast %23 : vector<1x128xi1> to vector<1x128xi1>
    %25 = vector.broadcast %24 : vector<1x128xi1> to vector<32x128xi1>
    %26 = vector.shape_cast %21 : vector<32x1xf32> to vector<32x1xf32>
    %27 = vector.broadcast %26 : vector<32x1xf32> to vector<32x128xf32>
    %28 = arith.select %25, %27, %20 : vector<32x128xi1>, vector<32x128xf32>
    %c-1_i32 = arith.constant -1 : i32
    %29 = vector.broadcast %c-1_i32 : i32 to vector<1x128xi32>
    %30 = arith.addi %14, %29 : vector<1x128xi32>
    %c0_i32_9 = arith.constant 0 : i32
    %31 = vector.broadcast %c0_i32_9 : i32 to vector<1x128xi32>
    %32 = arith.cmpi sge, %30, %31 : vector<1x128xi32>
    %c300_i32_10 = arith.constant 300 : i32
    %33 = vector.broadcast %c300_i32_10 : i32 to vector<1x128xi32>
    %34 = arith.cmpi slt, %30, %33 : vector<1x128xi32>
    %35 = arith.andi %32, %34 : vector<1x128xi1>
    %cst_11 = arith.constant 0.000000e+00 : f32
    %36 = vector.shape_cast %35 : vector<1x128xi1> to vector<1x128xi1>
    %37 = vector.broadcast %36 : vector<1x128xi1> to vector<32x128xi1>
    %38 = vector.broadcast %cst_11 : f32 to vector<32x128xf32>
    %39 = arith.select %37, %28, %38 : vector<32x128xi1>, vector<32x128xf32>
    %40 = vector.broadcast %19 : vector<32x1xf32> to vector<32x128xf32>
    %41 = arith.mulf %39, %40 : vector<32x128xf32>
    %42 = arith.addf %17, %41 : vector<32x128xf32>
    %c1 = arith.constant 1 : index
    %c0_12 = arith.constant 0 : index
    %c0_13 = arith.constant 0 : index
    %43 = vector.load %arg3[%c1, %c0_12, %c0_13] : memref<3x32x1xf32, #tpu.memory_space<vmem>>, vector<1x32x1xf32>
    %44 = vector.shape_cast %43 : vector<1x32x1xf32> to vector<32x1xf32>
    %45 = vector.broadcast %44 : vector<32x1xf32> to vector<32x128xf32>
    %46 = arith.mulf %0, %45 : vector<32x128xf32>
    %47 = arith.addf %42, %46 : vector<32x128xf32>
    %c2 = arith.constant 2 : index
    %c0_14 = arith.constant 0 : index
    %c0_15 = arith.constant 0 : index
    %48 = vector.load %arg3[%c2, %c0_14, %c0_15] : memref<3x32x1xf32, #tpu.memory_space<vmem>>, vector<1x32x1xf32>
    %49 = vector.shape_cast %48 : vector<1x32x1xf32> to vector<32x1xf32>
    %c127_i32 = arith.constant 127 : i32
    %50 = tpu.dynamic_rotate %0 by %c127_i32 dim 1 : vector<32x128xf32>, i32 -> vector<32x128xf32>
    %51 = vector.extract_strided_slice %2 {offsets = [0, 1], sizes = [32, 1], strides = [1, 1]} : vector<32x2xf32> to vector<32x1xf32>
    %c127_i32_16 = arith.constant 127 : i32
    %52 = vector.broadcast %c127_i32_16 : i32 to vector<1x128xi32>
    %53 = arith.cmpi eq, %3, %52 : vector<1x128xi32>
    %54 = vector.shape_cast %53 : vector<1x128xi1> to vector<1x128xi1>
    %55 = vector.broadcast %54 : vector<1x128xi1> to vector<32x128xi1>
    %56 = vector.shape_cast %51 : vector<32x1xf32> to vector<32x1xf32>
    %57 = vector.broadcast %56 : vector<32x1xf32> to vector<32x128xf32>
    %58 = arith.select %55, %57, %50 : vector<32x128xi1>, vector<32x128xf32>
    %c1_i32_17 = arith.constant 1 : i32
    %59 = vector.broadcast %c1_i32_17 : i32 to vector<1x128xi32>
    %60 = arith.addi %14, %59 : vector<1x128xi32>
    %c0_i32_18 = arith.constant 0 : i32
    %61 = vector.broadcast %c0_i32_18 : i32 to vector<1x128xi32>
    %62 = arith.cmpi sge, %60, %61 : vector<1x128xi32>
    %c300_i32_19 = arith.constant 300 : i32
    %63 = vector.broadcast %c300_i32_19 : i32 to vector<1x128xi32>
    %64 = arith.cmpi slt, %60, %63 : vector<1x128xi32>
    %65 = arith.andi %62, %64 : vector<1x128xi1>
    %cst_20 = arith.constant 0.000000e+00 : f32
    %66 = vector.shape_cast %65 : vector<1x128xi1> to vector<1x128xi1>
    %67 = vector.broadcast %66 : vector<1x128xi1> to vector<32x128xi1>
    %68 = vector.broadcast %cst_20 : f32 to vector<32x128xf32>
    %69 = arith.select %67, %58, %68 : vector<32x128xi1>, vector<32x128xf32>
    %70 = vector.broadcast %49 : vector<32x1xf32> to vector<32x128xf32>
    %71 = arith.mulf %69, %70 : vector<32x128xf32>
    %72 = arith.addf %47, %71 : vector<32x128xf32>
    %c0_21 = arith.constant 0 : index
    %c0_22 = arith.constant 0 : index
    %73 = vector.load %arg4[%c0_21, %c0_22] : memref<32x1xf32, #tpu.memory_space<vmem>>, vector<32x1xf32>
    %74 = vector.broadcast %73 : vector<32x1xf32> to vector<32x128xf32>
    %75 = arith.addf %72, %74 : vector<32x128xf32>
    %c0_23 = arith.constant 0 : index
    %c0_24 = arith.constant 0 : index
    %76 = vector.load %arg5[%c0_23, %c0_24] : memref<32x32xbf16, #tpu.memory_space<vmem>>, vector<32x32xbf16>
    %77 = arith.truncf %75 : vector<32x128xf32> to vector<32x128xbf16>
    %cst_25 = arith.constant dense<0.000000e+00> : vector<32x128xf32>
    %78 = tpu.matmul %76, %77, %cst_25 {dimension_numbers = #tpu.dot_dimension_numbers<[1], [0], [0], [1], [0, 0, 1, 1], [], []>} : vector<32x32xbf16>, vector<32x128xbf16>, vector<32x128xf32> -> vector<32x128xf32>
    %c0_26 = arith.constant 0 : index
    %c0_27 = arith.constant 0 : index
    %79 = vector.load %arg6[%c0_26, %c0_27] : memref<32x1xf32, #tpu.memory_space<vmem>>, vector<32x1xf32>
    %80 = vector.broadcast %79 : vector<32x1xf32> to vector<32x128xf32>
    %81 = arith.addf %78, %80 : vector<32x128xf32>
    %82 = tpu.iota {dimensions = array<i32: 0>} : vector<8x128xi32>
    %83 = vector.broadcast %11 : vector<1x128xi32> to vector<8x128xi32>
    %84 = arith.cmpi eq, %82, %83 : vector<8x128xi32>
    %85 = vector.broadcast %16 : vector<1x128xi1> to vector<8x128xi1>
    %86 = arith.andi %84, %85 : vector<8x128xi1>
    %cst_28 = arith.constant 1.000000e+00 : f32
    %cst_29 = arith.constant 0.000000e+00 : f32
    %87 = vector.broadcast %cst_28 : f32 to vector<8x128xf32>
    %88 = vector.broadcast %cst_29 : f32 to vector<8x128xf32>
    %89 = arith.select %86, %87, %88 : vector<8x128xi1>, vector<8x128xf32>
    %90 = arith.truncf %89 : vector<8x128xf32> to vector<8x128xbf16>
    %c0_30 = arith.constant 0 : index
    %c0_31 = arith.constant 0 : index
    %91 = vector.load %arg7[%c0_30, %c0_31] : memref<64x8xbf16, #tpu.memory_space<vmem>>, vector<64x8xbf16>
    %cst_32 = arith.constant dense<0.000000e+00> : vector<64x128xf32>
    %92 = tpu.matmul %91, %90, %cst_32 {dimension_numbers = #tpu.dot_dimension_numbers<[1], [0], [0], [1], [0, 0, 1, 1], [], []>} : vector<64x8xbf16>, vector<8x128xbf16>, vector<64x128xf32> -> vector<64x128xf32>
    %93 = vector.extract_strided_slice %92 {offsets = [0, 0], sizes = [32, 128], strides = [1, 1]} : vector<64x128xf32> to vector<32x128xf32>
    %94 = arith.mulf %93, %81 : vector<32x128xf32>
    %95 = vector.extract_strided_slice %92 {offsets = [32, 0], sizes = [32, 128], strides = [1, 1]} : vector<64x128xf32> to vector<32x128xf32>
    %96 = arith.addf %94, %95 : vector<32x128xf32>
    %cst_33 = arith.constant dense<0.000000e+00> : vector<128xf32>
    %97 = vector.multi_reduction <add>, %96, %cst_33 [0] : vector<32x128xf32> to vector<128xf32>
    %98 = vector.shape_cast %97 : vector<128xf32> to vector<1x128xf32>
    %99 = arith.mulf %96, %96 : vector<32x128xf32>
    %cst_34 = arith.constant dense<0.000000e+00> : vector<128xf32>
    %100 = vector.multi_reduction <add>, %99, %cst_34 [0] : vector<32x128xf32> to vector<128xf32>
    %101 = vector.shape_cast %100 : vector<128xf32> to vector<1x128xf32>
    %102 = tpu.concatenate %98, %101 in 0 : vector<1x128xf32>, vector<1x128xf32> -> vector<2x128xf32>
    %c128_i32_35 = arith.constant 128 : i32
    %103 = arith.muli %arg0, %c128_i32_35 : i32
    %104 = tpu.iota {dimensions = array<i32: 0>} : vector<128x8xi32>
    %105 = vector.broadcast %103 : i32 to vector<128x8xi32>
    %106 = arith.addi %105, %104 : vector<128x8xi32>
    %107 = tpu.iota {dimensions = array<i32: 1>} : vector<128x8xi32>
    %c300_i32_36 = arith.constant 300 : i32
    %108 = vector.broadcast %c300_i32_36 : i32 to vector<128x8xi32>
    %109 = arith.muli %107, %108 : vector<128x8xi32>
    %110 = arith.cmpi sge, %106, %109 : vector<128x8xi32>
    %c1_i32_37 = arith.constant 1 : i32
    %111 = vector.broadcast %c1_i32_37 : i32 to vector<128x8xi32>
    %112 = arith.addi %107, %111 : vector<128x8xi32>
    %c300_i32_38 = arith.constant 300 : i32
    %113 = vector.broadcast %c300_i32_38 : i32 to vector<128x8xi32>
    %114 = arith.muli %112, %113 : vector<128x8xi32>
    %115 = arith.cmpi slt, %106, %114 : vector<128x8xi32>
    %116 = arith.andi %110, %115 : vector<128x8xi1>
    %c600_i32_39 = arith.constant 600 : i32
    %117 = vector.broadcast %c600_i32_39 : i32 to vector<128x8xi32>
    %118 = arith.cmpi slt, %106, %117 : vector<128x8xi32>
    %119 = arith.andi %116, %118 : vector<128x8xi1>
    %cst_40 = arith.constant 1.000000e+00 : f32
    %cst_41 = arith.constant 0.000000e+00 : f32
    %120 = vector.broadcast %cst_40 : f32 to vector<128x8xf32>
    %121 = vector.broadcast %cst_41 : f32 to vector<128x8xf32>
    %122 = arith.select %119, %120, %121 : vector<128x8xi1>, vector<128x8xf32>
    %cst_42 = arith.constant dense<0.000000e+00> : vector<2x8xf32>
    %123 = tpu.matmul %102, %122, %cst_42 {dimension_numbers = #tpu.dot_dimension_numbers<[1], [0], [0], [1], [0, 0, 1, 1], [], []>} : vector<2x128xf32>, vector<128x8xf32>, vector<2x8xf32> -> vector<2x8xf32>
    %c0_43 = arith.constant 0 : index
    %c0_44 = arith.constant 0 : index
    %c0_45 = arith.constant 0 : index
    %124 = vector.load %arg9[%c0_43, %c0_44, %c0_45] : memref<1x2x8xf32, #tpu.memory_space<vmem>>, vector<1x2x8xf32>
    %125 = vector.shape_cast %124 : vector<1x2x8xf32> to vector<2x8xf32>
    %126 = vector.shape_cast %123 : vector<2x8xf32> to vector<1x2x8xf32>
    tpu.vector_store %arg9[%c0_43, %c0_44, %c0_45], %126 {strides = array<i32>} : memref<1x2x8xf32, #tpu.memory_space<vmem>>, vector<1x2x8xf32>,
    %127 = arith.truncf %96 : vector<32x128xf32> to vector<32x128xbf16>
    %c0_46 = arith.constant 0 : index
    %c0_47 = arith.constant 0 : index
    %128 = vector.load %arg8[%c0_46, %c0_47] : memref<32x128xbf16, #tpu.memory_space<vmem>>, vector<32x128xbf16>
    tpu.vector_store %arg8[%c0_46, %c0_47], %127 {strides = array<i32>} : memref<32x128xbf16, #tpu.memory_space<vmem>>, vector<32x128xbf16>,
    return
  }
  func.func @transform_0(%arg0: i32) -> (i32, i32) {
    %c0_i32 = arith.constant 0 : i32
    %c0_i32_0 = arith.constant 0 : i32
    return %c0_i32, %arg0 : i32, i32
  }
  func.func @transform_1(%arg0: i32) -> (i32, i32, i32) {
    %c0_i32 = arith.constant 0 : i32
    %c0_i32_0 = arith.constant 0 : i32
    %c0_i32_1 = arith.constant 0 : i32
    return %arg0, %c0_i32, %c0_i32_0 : i32, i32, i32
  }
  func.func @transform_2(%arg0: i32) -> (i32, i32, i32) {
    %c0_i32 = arith.constant 0 : i32
    %c0_i32_0 = arith.constant 0 : i32
    %c0_i32_1 = arith.constant 0 : i32
    %c0_i32_2 = arith.constant 0 : i32
    return %c0_i32, %c0_i32_0, %c0_i32_1 : i32, i32, i32
  }
  func.func @transform_3(%arg0: i32) -> (i32, i32) {
    %c0_i32 = arith.constant 0 : i32
    %c0_i32_0 = arith.constant 0 : i32
    %c0_i32_1 = arith.constant 0 : i32
    return %c0_i32, %c0_i32_0 : i32, i32
  }
  func.func @transform_4(%arg0: i32) -> (i32, i32) {
    %c0_i32 = arith.constant 0 : i32
    %c0_i32_0 = arith.constant 0 : i32
    %c0_i32_1 = arith.constant 0 : i32
    return %c0_i32, %c0_i32_0 : i32, i32
  }
  func.func @transform_5(%arg0: i32) -> (i32, i32) {
    %c0_i32 = arith.constant 0 : i32
    %c0_i32_0 = arith.constant 0 : i32
    %c0_i32_1 = arith.constant 0 : i32
    return %c0_i32, %c0_i32_0 : i32, i32
  }
  func.func @transform_6(%arg0: i32) -> (i32, i32) {
    %c0_i32 = arith.constant 0 : i32
    %c0_i32_0 = arith.constant 0 : i32
    %c0_i32_1 = arith.constant 0 : i32
    return %c0_i32, %c0_i32_0 : i32, i32
  }
  func.func @transform_7(%arg0: i32) -> (i32, i32) {
    %c0_i32 = arith.constant 0 : i32
    %c0_i32_0 = arith.constant 0 : i32
    return %c0_i32, %arg0 : i32, i32
  }
  func.func @transform_8(%arg0: i32) -> (i32, i32, i32) {
    %c0_i32 = arith.constant 0 : i32
    %c0_i32_0 = arith.constant 0 : i32
    %c0_i32_1 = arith.constant 0 : i32
    return %arg0, %c0_i32, %c0_i32_0 : i32, i32, i32
  }
}

module attributes {stable_mosaic.version = 11 : i64} {
  func.func @kernel(%arg0: i32, %arg1: memref<32x128xbf16, #tpu.memory_space<vmem>>, %arg2: memref<32x128xf32, #tpu.memory_space<vmem>>, %arg3: memref<2x8xf32, #tpu.memory_space<vmem>>, %arg4: memref<32x1xf32, #tpu.memory_space<vmem>>, %arg5: memref<32x1xf32, #tpu.memory_space<vmem>>, %arg6: memref<8x32xbf16, #tpu.memory_space<vmem>>, %arg7: memref<8x1xf32, #tpu.memory_space<vmem>>, %arg8: memref<8x128xf32, #tpu.memory_space<vmem>>) attributes {dimension_semantics = [#tpu.dimension_semantics<parallel>], iteration_bounds = array<i64: 5>, scalar_prefetch = 0 : i64, scratch_operands = 0 : i64, tpu.core_type = #tpu.core_type<tc>, window_params = [{transform_indices = @transform_0, window_bounds = array<i64: 32, 128>}, {transform_indices = @transform_1, window_bounds = array<i64: 32, 128>}, {pipeline_mode = #tpu.pipeline_mode<synchronous>, transform_indices = @transform_2, window_bounds = array<i64: 2, 8>}, {pipeline_mode = #tpu.pipeline_mode<synchronous>, transform_indices = @transform_3, window_bounds = array<i64: 32, 1>}, {pipeline_mode = #tpu.pipeline_mode<synchronous>, transform_indices = @transform_4, window_bounds = array<i64: 32, 1>}, {pipeline_mode = #tpu.pipeline_mode<synchronous>, transform_indices = @transform_5, window_bounds = array<i64: 8, 32>}, {pipeline_mode = #tpu.pipeline_mode<synchronous>, transform_indices = @transform_6, window_bounds = array<i64: 8, 1>}, {transform_indices = @transform_7, window_bounds = array<i64: 8, 128>}]} {
    %c0 = arith.constant 0 : index
    %c0_0 = arith.constant 0 : index
    %0 = vector.load %arg1[%c0, %c0_0] : memref<32x128xbf16, #tpu.memory_space<vmem>>, vector<32x128xbf16>
    %1 = arith.extf %0 : vector<32x128xbf16> to vector<32x128xf32>
    %c128_i32 = arith.constant 128 : i32
    %2 = arith.muli %arg0, %c128_i32 : i32
    %3 = tpu.iota {dimensions = array<i32: 1>} : vector<1x128xi32>
    %4 = vector.broadcast %2 : i32 to vector<1x128xi32>
    %5 = arith.addi %4, %3 : vector<1x128xi32>
    %c0_i32 = arith.constant 0 : i32
    %6 = vector.broadcast %c0_i32 : i32 to vector<1x128xi32>
    %c300_i32 = arith.constant 300 : i32
    %7 = vector.broadcast %c300_i32 : i32 to vector<1x128xi32>
    %8 = arith.cmpi sge, %5, %7 : vector<1x128xi32>
    %9 = arith.extui %8 : vector<1x128xi1> to vector<1x128xi32>
    %10 = arith.addi %6, %9 : vector<1x128xi32>
    %c600_i32 = arith.constant 600 : i32
    %11 = vector.broadcast %c600_i32 : i32 to vector<1x128xi32>
    %12 = arith.cmpi slt, %5, %11 : vector<1x128xi32>
    %13 = tpu.iota {dimensions = array<i32: 0>} : vector<8x128xi32>
    %14 = vector.broadcast %10 : vector<1x128xi32> to vector<8x128xi32>
    %15 = arith.cmpi eq, %13, %14 : vector<8x128xi32>
    %16 = vector.broadcast %12 : vector<1x128xi1> to vector<8x128xi1>
    %17 = arith.andi %15, %16 : vector<8x128xi1>
    %cst = arith.constant 1.000000e+00 : f32
    %cst_1 = arith.constant 0.000000e+00 : f32
    %18 = vector.broadcast %cst : f32 to vector<8x128xf32>
    %19 = vector.broadcast %cst_1 : f32 to vector<8x128xf32>
    %20 = arith.select %17, %18, %19 : vector<8x128xi1>, vector<8x128xf32>
    %c0_2 = arith.constant 0 : index
    %c0_3 = arith.constant 0 : index
    %21 = vector.load %arg3[%c0_2, %c0_3] : memref<2x8xf32, #tpu.memory_space<vmem>>, vector<2x8xf32>
    %cst_4 = arith.constant dense<0.000000e+00> : vector<2x128xf32>
    %22 = tpu.matmul %21, %20, %cst_4 {dimension_numbers = #tpu.dot_dimension_numbers<[1], [0], [0], [1], [0, 0, 1, 1], [], []>} : vector<2x8xf32>, vector<8x128xf32>, vector<2x128xf32> -> vector<2x128xf32>
    %23 = vector.extract_strided_slice %22 {offsets = [0, 0], sizes = [1, 128], strides = [1, 1]} : vector<2x128xf32> to vector<1x128xf32>
    %24 = vector.broadcast %23 : vector<1x128xf32> to vector<32x128xf32>
    %25 = arith.mulf %1, %24 : vector<32x128xf32>
    %26 = vector.extract_strided_slice %22 {offsets = [1, 0], sizes = [1, 128], strides = [1, 1]} : vector<2x128xf32> to vector<1x128xf32>
    %27 = vector.broadcast %26 : vector<1x128xf32> to vector<32x128xf32>
    %28 = arith.subf %25, %27 : vector<32x128xf32>
    %c0_5 = arith.constant 0 : index
    %c0_6 = arith.constant 0 : index
    %29 = vector.load %arg4[%c0_5, %c0_6] : memref<32x1xf32, #tpu.memory_space<vmem>>, vector<32x1xf32>
    %30 = vector.broadcast %29 : vector<32x1xf32> to vector<32x128xf32>
    %31 = arith.mulf %28, %30 : vector<32x128xf32>
    %c0_7 = arith.constant 0 : index
    %c0_8 = arith.constant 0 : index
    %32 = vector.load %arg5[%c0_7, %c0_8] : memref<32x1xf32, #tpu.memory_space<vmem>>, vector<32x1xf32>
    %33 = vector.broadcast %32 : vector<32x1xf32> to vector<32x128xf32>
    %34 = arith.addf %31, %33 : vector<32x128xf32>
    %c0_9 = arith.constant 0 : index
    %c0_10 = arith.constant 0 : index
    %35 = vector.load %arg2[%c0_9, %c0_10] : memref<32x128xf32, #tpu.memory_space<vmem>>, vector<32x128xf32>
    %36 = arith.addf %34, %35 : vector<32x128xf32>
    %c0_11 = arith.constant 0 : index
    %c0_12 = arith.constant 0 : index
    %37 = vector.load %arg6[%c0_11, %c0_12] : memref<8x32xbf16, #tpu.memory_space<vmem>>, vector<8x32xbf16>
    %38 = arith.truncf %36 : vector<32x128xf32> to vector<32x128xbf16>
    %cst_13 = arith.constant dense<0.000000e+00> : vector<8x128xf32>
    %39 = tpu.matmul %37, %38, %cst_13 {dimension_numbers = #tpu.dot_dimension_numbers<[1], [0], [0], [1], [0, 0, 1, 1], [], []>} : vector<8x32xbf16>, vector<32x128xbf16>, vector<8x128xf32> -> vector<8x128xf32>
    %c0_14 = arith.constant 0 : index
    %c0_15 = arith.constant 0 : index
    %40 = vector.load %arg7[%c0_14, %c0_15] : memref<8x1xf32, #tpu.memory_space<vmem>>, vector<8x1xf32>
    %41 = vector.broadcast %40 : vector<8x1xf32> to vector<8x128xf32>
    %42 = arith.addf %39, %41 : vector<8x128xf32>
    %c0_16 = arith.constant 0 : index
    %c0_17 = arith.constant 0 : index
    %43 = vector.load %arg8[%c0_16, %c0_17] : memref<8x128xf32, #tpu.memory_space<vmem>>, vector<8x128xf32>
    tpu.vector_store %arg8[%c0_16, %c0_17], %42 {strides = array<i32>} : memref<8x128xf32, #tpu.memory_space<vmem>>, vector<8x128xf32>,
    return
  }
  func.func @transform_0(%arg0: i32) -> (i32, i32) {
    %c0_i32 = arith.constant 0 : i32
    %c0_i32_0 = arith.constant 0 : i32
    return %c0_i32, %arg0 : i32, i32
  }
  func.func @transform_1(%arg0: i32) -> (i32, i32) {
    %c0_i32 = arith.constant 0 : i32
    %c0_i32_0 = arith.constant 0 : i32
    return %c0_i32, %arg0 : i32, i32
  }
  func.func @transform_2(%arg0: i32) -> (i32, i32) {
    %c0_i32 = arith.constant 0 : i32
    %c0_i32_0 = arith.constant 0 : i32
    %c0_i32_1 = arith.constant 0 : i32
    return %c0_i32, %c0_i32_0 : i32, i32
  }
  func.func @transform_3(%arg0: i32) -> (i32, i32) {
    %c0_i32 = arith.constant 0 : i32
    %c0_i32_0 = arith.constant 0 : i32
    %c0_i32_1 = arith.constant 0 : i32
    return %c0_i32, %c0_i32_0 : i32, i32
  }
  func.func @transform_4(%arg0: i32) -> (i32, i32) {
    %c0_i32 = arith.constant 0 : i32
    %c0_i32_0 = arith.constant 0 : i32
    %c0_i32_1 = arith.constant 0 : i32
    return %c0_i32, %c0_i32_0 : i32, i32
  }
  func.func @transform_5(%arg0: i32) -> (i32, i32) {
    %c0_i32 = arith.constant 0 : i32
    %c0_i32_0 = arith.constant 0 : i32
    %c0_i32_1 = arith.constant 0 : i32
    return %c0_i32, %c0_i32_0 : i32, i32
  }
  func.func @transform_6(%arg0: i32) -> (i32, i32) {
    %c0_i32 = arith.constant 0 : i32
    %c0_i32_0 = arith.constant 0 : i32
    %c0_i32_1 = arith.constant 0 : i32
    return %c0_i32, %c0_i32_0 : i32, i32
  }
  func.func @transform_7(%arg0: i32) -> (i32, i32) {
    %c0_i32 = arith.constant 0 : i32
    %c0_i32_0 = arith.constant 0 : i32
    return %c0_i32, %arg0 : i32, i32
  }
}

</mosaic_0001>

<bundles_post_ra>
// kernel: film_residual_block1d.3
= control target key start
LH: loop header
LB: loop body
LE: loop exit
PB: predicated region body
PF: predicated region fallthrough
CT: control target
= control target key end

     0   :  { %s849_s24 = smov 0   ;;  %s851_s25 = smov 0   ;;  %s955_s0 = inlined_call_operand.vmem [shape: bf16[32,640], index: 0, kind: input, shape index: {}]   ;;  %s956_s1 = inlined_call_operand.vmem [shape: f32[32,640], index: 1, kind: input, shape index: {}]   ;;  %s957_s2 = inlined_call_operand.vmem [shape: f32[2,8], index: 2, kind: input, shape index: {}]   ;;  %s958_s3 = inlined_call_operand.vmem [shape: f32[32,1], index: 3, kind: input, shape index: {}]   ;;  %s959_s4 = inlined_call_operand.vmem [shape: f32[32,1], index: 4, kind: input, shape index: {}]   ;;  %s960_s5 = inlined_call_operand.vmem [shape: bf16[8,32], index: 5, kind: input, shape index: {}]   ;;  %s961_s6 = inlined_call_operand.vmem [shape: f32[8,1], index: 6, kind: input, shape index: {}]   ;;  %s962_s7 = inlined_call_operand.vmem [shape: f32[8,640], index: 7, kind: output, shape index: {}]  }
   0x1   :  { %s853_s26 = smov 0  }
   0x2 LB: > { %s865_s27 = sadd.s32 4294967295, %s803_s26   ;;  %s868_s28 = sadd.s32 1, %s803_s26   ;;  %s803_s26 = sphi %s853_s26, %s966_s26   ;;  %s799_s25 = sphi %s851_s25, %s965_s25   ;;  %s795_s24 = sphi %s849_s24, %s964_s24  }
   0x3   : > { %s21_s29 = ssub.s32 %s803_s26, %s868_s28  ;;  %s24_s30 = sadd.s32 1, %s799_s25 }
   0x4   : > { %p22_p0 = scmp.eq.s32.totalorder %s21_s29, 0  ;;  %p31_p1 = scmp.ne.s32.totalorder %s799_s25, %s795_s24 }
   0x5   : > { %p32_p2 = scmp.eq.s32.totalorder %s803_s26, 0  ;;  %p709_p4 = scmp.ge.s32.totalorder %s803_s26, 5 }
   0x6   : > { %s877_s8 = scalar_select %p22_p0, %s799_s25, %s24_s30  }
   0x7   : > { %p879_p3 = por %p32_p2, %p31_p1  ;;  %229 = sbr.rel (%p709_p4) target bundleno = 28 (0x1c), region = 36 }
   0xe   : > { %232 = sbr.rel (!%p879_p3) target bundleno = 21 (0x15), region = 40  ;;  %s234_s10 = sand.u32 (%p879_p3), 1, %s799_s25  }
   0xf   : > { %s711_s11 = sshll.u32 (%p879_p3), %s803_s26, 2  ;;  %s710_s12 = sshll.u32 (%p879_p3), %s234_s10, 4 }
  0x10   : > { %s238_s15 = scalar_lea.vmem (%p879_p3), %s955_s0, %s711_s11  ;;  %s236_s16 = scalar_lea.vmem (%p879_p3), [#allocation2], %s710_s12 }
  0x11   : > { %v254_v0 = vld [vmem:[%s238_s15] sm:$0xf] (%p879_p3)  ;;  %v256_v1 = vld [vmem:[%s238_s15 + $0x14] sm:$0xf] (%p879_p3)  ;;  %v258_v2 = vld [vmem:[%s238_s15 + $0x28] sm:$0xf] (%p879_p3) }
  0x12   : > { %255 = vst [vmem:[%s236_s16] sm:$0xf] (%p879_p3), %v254_v0  ;;  %257 = vst [vmem:[%s236_s16 + $0x4] sm:$0xf] (%p879_p3), %v256_v1  ;;  %v260_v3 = vld [vmem:[%s238_s15 + $0x3c] sm:$0xf] (%p879_p3) }
  0x13   : > { %259 = vst [vmem:[%s236_s16 + $0x8] sm:$0xf] (%p879_p3), %v258_v2  ;;  %261 = vst [vmem:[%s236_s16 + $0xc] sm:$0xf] (%p879_p3), %v260_v3 }
  0x15 PF: > { %292 = sbr.rel (!%p879_p3) target bundleno = 28 (0x1c), region = 81  ;;  %s294_s17 = sand.u32 (%p879_p3), 1, %s799_s25  }
  0x16   : > { %s713_s18 = sshll.u32 (%p879_p3), %s803_s26, 3  ;;  %s712_s19 = sshll.u32 (%p879_p3), %s294_s17, 5 }
  0x17   : > { %s298_s22 = scalar_lea.vmem (%p879_p3), %s956_s1, %s713_s18  ;;  %s296_s23 = scalar_lea.vmem (%p879_p3), [#allocation3], %s712_s19 }
  0x18   : > { %v332_v4 = vld [vmem:[%s298_s22] sm:$0xff] (%p879_p3)  ;;  %v334_v5 = vld [vmem:[%s298_s22 + $0x28] sm:$0xff] (%p879_p3)  ;;  %v336_v6 = vld [vmem:[%s298_s22 + $0x50] sm:$0xff] (%p879_p3) }
  0x19   : > { %333 = vst [vmem:[%s296_s23] sm:$0xff] (%p879_p3), %v332_v4  ;;  %335 = vst [vmem:[%s296_s23 + $0x8] sm:$0xff] (%p879_p3), %v334_v5  ;;  %v338_v7 = vld [vmem:[%s298_s22 + $0x78] sm:$0xff] (%p879_p3) }
  0x1a   : > { %337 = vst [vmem:[%s296_s23 + $0x10] sm:$0xff] (%p879_p3), %v336_v6  ;;  %339 = vst [vmem:[%s296_s23 + $0x18] sm:$0xff] (%p879_p3), %v338_v7 }
  0x1c PF: > { %p714_p5 = scmp.ge.s32.totalorder %s803_s26, 1  ;;  %p344_p6 = scmp.lt.s32.totalorder %s803_s26, 6 }
  0x1e   : > { %p345_p7 = pnand %p714_p5, %p344_p6 }
  0x1f   : > { %s718_s29 = sshll.u32 (!%p345_p7), %s865_s27, 7  ;;  %v406_v8 = vlaneseq (!%p345_p7)  ;;  %v805_v9 = vmov (!%p345_p7), 0.0   ;;  %v806_v11 = vmov (!%p345_p7), 0   ;;  %v511_v12 = vld [vmem:[%s958_s3] sm:$0xff] (!%p345_p7)  ;;  %vm807_vm0 = vmmov (!%p345_p7), 0   ;;  %v512_v15 = vld [vmem:[%s958_s3 + $0x8] sm:$0xff] (!%p345_p7) }
  0x20   : > { %348 = sbr.rel (%p345_p7) target bundleno = 490 (0x1ea), region = 119  ;;  %738 = vmatprep.subr.mxu0 (!%p345_p7), %v805_v9  ;;  %v408_v10 = vstv (!%p345_p7), %s718_s29  ;;  %779 = vset.pattern.permute.xlu0 (!%p345_p7), %v806_v11  ;;  %v539_v13 = vld [vmem:[%s959_s4] sm:$0xff] (!%p345_p7)  ;;  %v540_v18 = vld [vmem:[%s959_s4 + $0x8] sm:$0xff] (!%p345_p7)  ;;  %v513_v20 = vld [vmem:[%s958_s3 + $0x10] sm:$0xff] (!%p345_p7)  ;;  %vm421_vm4 = vcmask (!%p345_p7), 64512   ;;  %v808_v23 = vmov (!%p345_p7), 1.0  }
  0x21   : > { %v407_v14 = vand.u32 (!%p345_p7), 127, %v406_v8  ;;  %740 = vmatprep.mubr.msk.f32.mxu0 (!%p345_p7), %vm807_vm0, %v805_v9  ;;  %517 = vperm.xlu0 (!%p345_p7), %779, %v511_v12   ;;  %v414_v17 = vshrl.u32 (!%p345_p7), %v406_v8, 7  ;;  %v420_v21 = vld [vmem:[%s957_s2] sm:$0x3] (!%p345_p7)  ;;  %v514_v22 = vld [vmem:[%s958_s3 + $0x18] sm:$0xff] (!%p345_p7)  ;;  %v541_v24 = vld [vmem:[%s959_s4 + $0x10] sm:$0xff] (!%p345_p7) }
  0x22   : > { %780 = vset.pattern.permute.xlu1 (!%p345_p7), %v806_v11  ;;  %743 = vmatprep.subr.bf16.mxu1 (!%p345_p7), %v805_v9  ;;  %v542_v25 = vld [vmem:[%s959_s4 + $0x18] sm:$0xff] (!%p345_p7)  ;;  %v578_v26 = vld [vmem:[%s961_s6] sm:$0xff] (!%p345_p7)  ;;  %s351_s10 = sand.u32 (!%p345_p7), 1, %s795_s24   ;;  %vm584_vm6 = vcmask (!%p345_p7), 261120   ;;  %p392_p8 = scmp.lt.s32.totalorder (!%p345_p7), %s865_s27, 4 }
  0x23   : > { %v409_v16 = vadd.s32 (!%p345_p7), %v408_v10, %v407_v14  ;;  %545 = vperm.xlu1 (!%p345_p7), %780, %v539_v13   ;;  %747 = vmatprep.mubr.msk.bf16.mxu1 (!%p345_p7), %vm807_vm0, %v805_v9  ;;  %s715_s11 = sshll.u32 (!%p345_p7), %s351_s10, 4  ;;  %v497_v33 = vsub.s32 (!%p345_p7), 0, %v414_v17  ;;  %v505_v34 = vsub.s32 (!%p345_p7), 1, %v414_v17  ;;  %s716_s24 = sshll.u32 (!%p345_p7), %s351_s10, 5  ;;  %v575_v10 = vld [vmem:[%s960_s5] sm:$0xf] (!%p345_p7) }
  0x24   : > { %s353_s26 = scalar_lea.vmem (!%p345_p7), [#allocation2], %s715_s11  ;;  %s360_s12 = scalar_lea.vmem (!%p345_p7), [#allocation3], %s716_s24 }
  0x25   : > { %vm410_vm1 = vcmp.ge.s32.totalorder (!%p345_p7), %v409_v16, 300  ;;  %vm412_vm2 = vcmp.lt.s32.totalorder (!%p345_p7), %v409_v16, 600  ;;  %522 = vperm.xlu0 (!%p345_p7), %779, %v512_v15   ;;  %v725_v31 = vld [vmem:[%s353_s26] sm:$0xff] (!%p345_p7)   ;;  %v732_v32 = vld [vmem:[%s353_s26 + $0x8] sm:$0xff] (!%p345_p7)  }
  0x26   : > { %v411_v19 = vsel (!%p345_p7), %vm410_vm1, 1, %v806_v11  ;;  %v726_v35 = vunpack.c.l.bf16 (!%p345_p7), %v725_v31  ;;  %v727_v36 = vunpack.c.h.bf16 (!%p345_p7), %v725_v31  ;;  %v730_v37 = vunpack.c.l.bf16 (!%p345_p7), %v732_v32  ;;  %v567_v59 = vld [vmem:[%s360_s12] sm:$0xff] (!%p345_p7)  ;;  %v568_v60 = vld [vmem:[%s360_s12 + $0x8] sm:$0xff] (!%p345_p7)  ;;  %v569_v1 = vld [vmem:[%s360_s12 + $0x10] sm:$0xff] (!%p345_p7) }
  0x27   : > { %vm415_vm3 = vcmp.eq.s32.totalorder %v414_v17, %v411_v19  ;;  %550 = vperm.xlu1 %780, %v540_v18   ;;  %v731_v38 = vunpack.c.h.bf16 %v732_v32  ;;  %v570_v2 = vld [vmem:[%s360_s12 + $0x18] sm:$0xff]  ;;  %s968_s27 = smov (!%p392_p8, %s865_s27), 4 }
  0x28   : > { %vm418_vm5 = vmand %vm415_vm3, %vm412_vm2  ;;  %s717_s15 = sshll.u32 %s968_s27, 3 }
  0x29   : > { %739 = vmatpush3.msk.msra.mxu0 %vm418_vm5, %v808_v23  ;;  %527 = vperm.xlu0 %779, %v513_v20   ;;  %s395_s18 = scalar_lea.vmem %s962_s7, %s717_s15 }
  0x2a   : > { %741 = vmatmul.mubr.msk.f32.vlgmr.msra.gmra.mrb[0].mxu0 %vm421_vm4, %v420_v21 }
  0x2b   : > { %532 = vperm.xlu1 %780, %v514_v22  }
  0x2d   : > { %555 = vperm.xlu0 %779, %v541_v24  }
  0x2f   : > { %560 = vperm.xlu1 %780, %v542_v25  }
  0x31   : > { %581 = vperm.xlu0 %779, %v578_v26  }
  0xa0   : > { %v518_v27 = vpop.permute.xlu0 %517 }
  0xa2   : > { %v546_v28 = vpop.permute.xlu1 %545 }
  0xa4   : > { %v523_v29 = vpop.permute.xlu0 %522 }
  0xa6   : > { %v551_v30 = vpop.permute.xlu1 %550 }
  0xa8   : > { %v528_v42 = vpop.permute.xlu0 %527 }
  0xaa   : > { %v533_v43 = vpop.permute.xlu1 %532 }
  0xac   : > { %v556_v57 = vpop.permute.xlu0 %555 }
  0xae   : > { %v561_v58 = vpop.permute.xlu1 %560 }
  0xb0   : > { %v582_v11 = vpop.permute.xlu0 %581 }
  0xfd   : > { %v491_v39 = vpop.f32.mrb[0].mxu0 }
  0xfe   : > { %v498_v40 = vrot.slane %v491_v39, %v497_v33  ;;  %v742_v41 = vpop.f32.mrb[1].mxu0  ;;  %v506_v44 = vrot.slane %v491_v39, %v505_v34 }
 0x100   : > { %v499_v45 = vmul.f32 %v726_v35, %v498_v40  ;;  %v500_v46 = vmul.f32 %v727_v36, %v498_v40  ;;  %v501_v47 = vmul.f32 %v730_v37, %v498_v40  ;;  %v502_v48 = vmul.f32 %v731_v38, %v498_v40 }
 0x102   : > { %v509_v49 = vsub.f32 %v501_v47, %v506_v44  ;;  %v510_v50 = vsub.f32 %v502_v48, %v506_v44  ;;  %v507_v51 = vsub.f32 %v499_v45, %v506_v44  ;;  %v508_v52 = vsub.f32 %v500_v46, %v506_v44 }
 0x104   : > { %v535_v53 = vmul.f32 %v518_v27, %v507_v51  ;;  %v536_v54 = vmul.f32 %v523_v29, %v508_v52  ;;  %v537_v55 = vmul.f32 %v528_v42, %v509_v49  ;;  %v538_v56 = vmul.f32 %v533_v43, %v510_v50 }
 0x106   : > { %v563_v61 = vadd.f32 %v546_v28, %v535_v53  ;;  %v564_v62 = vadd.f32 %v551_v30, %v536_v54  ;;  %v565_v63 = vadd.f32 %v556_v57, %v537_v55  ;;  %v566_v0 = vadd.f32 %v561_v58, %v538_v56 }
 0x108   : > { %v571_v3 = vadd.f32 %v567_v59, %v563_v61  ;;  %v572_v4 = vadd.f32 %v568_v60, %v564_v62  ;;  %v573_v6 = vadd.f32 %v569_v1, %v565_v63  ;;  %v574_v7 = vadd.f32 %v570_v2, %v566_v0 }
 0x10a   : > { %v576_v5 = vpack.c.bf16 %v572_v4, %v571_v3  ;;  %v577_v8 = vpack.c.bf16 %v574_v7, %v573_v6 }
 0x10c   : > { %744 = vmatpush3.bf16.msra.mxu1 %v576_v5 }
 0x10d   : > { %745 = vmatprep.subr.bf16.mxu1 %v805_v9 }
 0x110   : > { %746 = vmatpush3.bf16.msra.mxu1 %v577_v8 }
 0x113   : > { %748 = vmatmul.mubr.msk.bf16.vlgmr.msra.gmra.mrb[0].mxu1 %vm584_vm6, %v575_v10 }
 0x1e6   : > { %v622_v12 = vpop.f32.mrb[0].mxu1 }
 0x1e7   : > { %v623_v13 = vadd.f32 %v622_v12, %v582_v11  ;;  %v749_v14 = vpop.f32.mrb[1].mxu1 }
 0x1e8   : > { %v625_v9 = vpop.f32.mrb[2].mxu1 }
 0x1e9   : > { %628 = vst [vmem:[%s395_s18] sm:$0xff] %v623_v13  ;;  %v750_v15 = vpop.f32.mrb[3].mxu1 }
 0x1ea PF: > { %p14_p9 = scmp.ge.s32.totalorder %s868_s28, 7   ;;  %s964_s24 = smov %s799_s25 }
 0x1eb   : > { %s965_s25 = smov %s877_s8  ;;  %s966_s26 = smov %s868_s28 }
 0x1ec   :  { %16 = sbr.rel (!%p14_p9) target bundleno = 2 (0x2), region = 170 }

// kernel: film_residual_block1d.2
= control target key start
LH: loop header
LB: loop body
LE: loop exit
PB: predicated region body
PF: predicated region fallthrough
CT: control target
= control target key end

     0   :  { %s1534_s27 = smov 0   ;;  %s1536_s28 = smov 0   ;;  %s1886_s0 = inlined_call_operand.vmem [shape: f32[32,640], index: 0, kind: input, shape index: {}]   ;;  %s1887_s1 = inlined_call_operand.vmem [shape: f32[5,32,2], index: 1, kind: input, shape index: {}]   ;;  %s1888_s2 = inlined_call_operand.vmem [shape: f32[3,32,1], index: 2, kind: input, shape index: {}]   ;;  %s1889_s3 = inlined_call_operand.vmem [shape: f32[32,1], index: 3, kind: input, shape index: {}]   ;;  %s1890_s4 = inlined_call_operand.vmem [shape: bf16[32,32], index: 4, kind: input, shape index: {}]   ;;  %s1891_s5 = inlined_call_operand.vmem [shape: f32[32,1], index: 5, kind: input, shape index: {}]   ;;  %s1892_s6 = inlined_call_operand.vmem [shape: bf16[64,8], index: 6, kind: input, shape index: {}]   ;;  %s1893_s7 = inlined_call_operand.vmem [shape: bf16[32,640], index: 7, kind: output, shape index: {0}]   ;;  %s1894_s8 = inlined_call_operand.vmem [shape: f32[5,2,8], index: 8, kind: output, shape index: {1}]  }
   0x1   :  { %s1538_s29 = smov 0  }
   0x2 LB: > { %s1550_s30 = sadd.s32 4294967295, %s1479_s29   ;;  %s1553_s9 = sadd.s32 1, %s1479_s29   ;;  %s1479_s29 = sphi %s1538_s29, %s1902_s29   ;;  %s1475_s28 = sphi %s1536_s28, %s1901_s28   ;;  %s1471_s27 = sphi %s1534_s27, %s1900_s27  }
   0x3   : > { %s23_s10 = ssub.s32 %s1479_s29, %s1553_s9  ;;  %s26_s11 = sadd.s32 1, %s1475_s28 }
   0x4   : > { %p24_p0 = scmp.eq.s32.totalorder %s23_s10, 0  ;;  %p33_p1 = scmp.ne.s32.totalorder %s1475_s28, %s1471_s27 }
   0x5   : > { %p34_p2 = scmp.eq.s32.totalorder %s1479_s29, 0  ;;  %p194_p3 = scmp.eq.s32.totalorder %s1550_s30, 4 }
   0x6   : > { %s1563_s12 = scalar_select %p24_p0, %s1475_s28, %s26_s11  }
   0x7   : > { %p35_p4 = por %p34_p2, %p33_p1  ;;  %p1565_p5 = por %p194_p3, %p33_p1 }
   0x8   : > { %p1238_p6 = scmp.ge.s32.totalorder %s1479_s29, 5 }
   0xa   : > { %257 = sbr.rel (%p1238_p6) target bundleno = 24 (0x18), region = 36 }
  0x11   : > { %260 = sbr.rel (!%p35_p4) target bundleno = 24 (0x18), region = 40  ;;  %s262_s14 = sand.u32 (%p35_p4), 1, %s1475_s28  }
  0x12   : > { %s1240_s15 = sshll.u32 (%p35_p4), %s1479_s29, 3  ;;  %s1239_s16 = sshll.u32 (%p35_p4), %s262_s14, 5 }
  0x13   : > { %s266_s19 = scalar_lea.vmem (%p35_p4), %s1886_s0, %s1240_s15  ;;  %s264_s20 = scalar_lea.vmem (%p35_p4), [#allocation2], %s1239_s16 }
  0x14   : > { %v300_v0 = vld [vmem:[%s266_s19] sm:$0xff] (%p35_p4)  ;;  %v302_v1 = vld [vmem:[%s266_s19 + $0x28] sm:$0xff] (%p35_p4)  ;;  %v304_v2 = vld [vmem:[%s266_s19 + $0x50] sm:$0xff] (%p35_p4) }
  0x15   : > { %301 = vst [vmem:[%s264_s20] sm:$0xff] (%p35_p4), %v300_v0  ;;  %303 = vst [vmem:[%s264_s20 + $0x8] sm:$0xff] (%p35_p4), %v302_v1  ;;  %v306_v3 = vld [vmem:[%s266_s19 + $0x78] sm:$0xff] (%p35_p4) }
  0x16   : > { %305 = vst [vmem:[%s264_s20 + $0x10] sm:$0xff] (%p35_p4), %v304_v2  ;;  %307 = vst [vmem:[%s264_s20 + $0x18] sm:$0xff] (%p35_p4), %v306_v3 }
  0x18 PF: > { %p1241_p7 = scmp.ge.s32.totalorder %s1479_s29, 1  ;;  %p320_p8 = scmp.lt.s32.totalorder %s1479_s29, 6 }
  0x1a   : > { %p321_p9 = pnand %p1241_p7, %p320_p8 }
  0x1b   : > { %v396_v4 = vld [vmem:[%s1888_s2] sm:$0xff] (!%p321_p9)  ;;  %p368_p10 = scmp.lt.s32.totalorder (!%p321_p9), %s1550_s30, 4  ;;  %v1481_v5 = vmov (!%p321_p9), 0   ;;  %v1482_v6 = vmov (!%p321_p9), 1   ;;  %v397_v7 = vld [vmem:[%s1888_s2 + $0x8] sm:$0xff] (!%p321_p9)  ;;  %s327_s22 = sand.u32 (!%p321_p9), 1, %s1471_s27   ;;  %v386_v42 = vlaneseq (!%p321_p9) }
  0x1c   : > { %324 = sbr.rel (%p321_p9) target bundleno = 709 (0x2c5), region = 82  ;;  %1444 = vset.pattern.permute.xlu1 (!%p321_p9), %v1481_v5  ;;  %1445 = vset.pattern.permute.xlu0 (!%p321_p9), %v1482_v6  ;;  %v1249_v9 = vld [vmem:[%s1888_s2 + $0x28] sm:$0xff] (!%p321_p9)  ;;  %v1252_v12 = vld [vmem:[%s1888_s2 + $0x40] sm:$0xff] (!%p321_p9)  ;;  %v399_v16 = vld [vmem:[%s1888_s2 + $0x18] sm:$0xff] (!%p321_p9)  ;;  %s1242_s10 = sshll.u32 (!%p321_p9), %s327_s22, 5  ;;  %vm648_vm0 = vcmask (!%p321_p9), 261120  }
  0x1d   : > { %447 = vperm.xlu1 (!%p321_p9), %1444, %v396_v4   ;;  %v1248_v13 = vld [vmem:[%s1888_s2 + $0x20] sm:$0xff] (!%p321_p9)  ;;  %v1253_v14 = vld [vmem:[%s1888_s2 + $0x48] sm:$0xff] (!%p321_p9)  ;;  %v398_v17 = vld [vmem:[%s1888_s2 + $0x10] sm:$0xff] (!%p321_p9)  ;;  %s329_s17 = scalar_lea.vmem (!%p321_p9), [#allocation2], %s1242_s10  ;;  %s1483_s18 = smov (!%p321_p9), 1   ;;  %v1676_v45 = vand.u32 (!%p321_p9), 127, %v386_v42 }
  0x1e   : > { %v1251_v18 = vld [vmem:[%s1888_s2 + $0x38] sm:$0xff] (!%p321_p9)  ;;  %v1250_v19 = vld [vmem:[%s1888_s2 + $0x30] sm:$0xff] (!%p321_p9)  ;;  %v1621_v20 = vld [vmem:[%s329_s17 + $0x8] sm:$0xff] (!%p321_p9)  ;;  %s1484_s25 = smov (!%p321_p9), 127   ;;  %vm753_vm13 = vcmask (!%p321_p9), 1043456   ;;  %vm740_vm14 = vcmask (!%p321_p9), 64512  }
  0x1f   : > { %v1255_v21 = vld [vmem:[%s1888_s2 + $0x58] sm:$0xff] (!%p321_p9)  ;;  %v1627_v22 = vld [vmem:[%s329_s17] sm:$0xff] (!%p321_p9)  ;;  %v1254_v23 = vld [vmem:[%s1888_s2 + $0x50] sm:$0xff] (!%p321_p9)  ;;  %vm408_vm2 = vcmp.eq.s32.totalorder (!%p321_p9), %v1676_v45, 0  ;;  %vm519_vm5 = vcmp.eq.s32.totalorder (!%p321_p9), %v1676_v45, 127  ;;  %v902_v4 = vadd.s32 (!%p321_p9), 1, %v1676_v45 }
  0x20   : > { %v1635_v24 = vld [vmem:[%s329_s17 + $0x10] sm:$0xff] (!%p321_p9)  ;;  %v580_v25 = vld [vmem:[%s1889_s3] sm:$0xff] (!%p321_p9)  ;;  %v581_v27 = vld [vmem:[%s1889_s3 + $0x8] sm:$0xff] (!%p321_p9)  ;;  %s1243_s14 = sshll.u32 (!%p321_p9), %s327_s22, 4 }
  0x21   : > { %452 = vperm.xlu1 (!%p321_p9), %1444, %v397_v7   ;;  %v582_v26 = vld [vmem:[%s1889_s3 + $0x10] sm:$0xff] (!%p321_p9)  ;;  %v614_v28 = vld [vmem:[%s1891_s5] sm:$0xff] (!%p321_p9)  ;;  %v1652_v29 = vld [vmem:[%s329_s17 + $0x18] sm:$0xff] (!%p321_p9) }
  0x22   : > { %v616_v30 = vld [vmem:[%s1891_s5 + $0x10] sm:$0xff] (!%p321_p9)  ;;  %v583_v31 = vld [vmem:[%s1889_s3 + $0x18] sm:$0xff] (!%p321_p9)  ;;  %v615_v32 = vld [vmem:[%s1891_s5 + $0x8] sm:$0xff] (!%p321_p9) }
  0x23   : > { %s1583_s23 = scalar_select %p368_p10, %s1550_s30, 4  ;;  %v617_v33 = vld [vmem:[%s1891_s5 + $0x18] sm:$0xff]  ;;  %v1451_v34 = vld [vmem:[%s1890_s4] sm:$0xff]  }
  0x24   : > { %1338 = vmatprep.mubr.msk.bf16.mxu0 %vm648_vm0, %v1451_v34 }
  0x25   : > { %s1292_s26 = sshll.u32 %s1583_s23, 5  ;;  %485 = vperm.xlu1 %1444, %v1249_v9   ;;  %s1246_s27 = sshll.u32 %s1583_s23, 1 }
  0x26   : > { %s372_s11 = scalar_lea.vmem %s1887_s1, %s1292_s26 }
  0x27   : > { %v382_v8 = vld [vmem:[%s372_s11] sm:$0xff]  ;;  %v384_v10 = vld [vmem:[%s372_s11 + $0x10] sm:$0xff]  ;;  %v383_v11 = vld [vmem:[%s372_s11 + $0x8] sm:$0xff] }
  0x28   : > { %523 = vperm.xlu0 %1445, %v382_v8   ;;  %v385_v15 = vld [vmem:[%s372_s11 + $0x18] sm:$0xff]  ;;  %s1289_s11 = sshll.u32 (%p1565_p5), %s1550_s30, 2 }
  0x29   : > { %1446 = vset.pattern.permute.xlu1 %v1482_v6  ;;  %s1088_s19 = scalar_lea.vmem (%p1565_p5), %s1893_s7, %s1289_s11 }
  0x2a   : > { %527 = vperm.xlu1 %1446, %v383_v11  }
  0x2c   : > { %531 = vperm.xlu0 %1445, %v384_v10  }
  0x2e   : > { %1447 = vset.pattern.permute.xlu1 %v1481_v5 }
  0x2f   : > { %423 = vperm.xlu1 %1447, %v384_v10  }
  0x30   : > { %1448 = vset.pattern.permute.xlu0 %v1481_v5 }
  0x31   : > { %413 = vperm.xlu0 %1448, %v382_v8  }
  0x33   : > { %554 = vperm.xlu1 %1447, %v1252_v12  }
  0x35   : > { %418 = vperm.xlu0 %1448, %v383_v11  }
  0x37   : > { %559 = vperm.xlu1 %1447, %v1253_v14  }
  0x39   : > { %480 = vperm.xlu0 %1448, %v1248_v13  }
  0x3b   : > { %462 = vperm.xlu1 %1447, %v399_v16  }
  0x3d   : > { %428 = vperm.xlu0 %1448, %v385_v15  }
  0x3f   : > { %495 = vperm.xlu1 %1447, %v1251_v18  }
  0x41   : > { %457 = vperm.xlu0 %1448, %v398_v17  }
  0x43   : > { %1449 = vset.pattern.permute.xlu1 %v1482_v6 }
  0x44   : > { %535 = vperm.xlu1 %1449, %v385_v15  }
  0x45   : > { %490 = vperm.xlu0 %1448, %v1250_v19  }
  0x48   : > { %400 = vrot.lane.b32.xlu1 %v1627_v22, %s1483_s18 }
  0x49   : > { %402 = vrot.lane.b32.xlu0 %v1621_v20, %s1483_s18  ;;  %1450 = vset.pattern.permute.xlu1 %v1481_v5 }
  0x4c   : > { %564 = vperm.xlu1 %1450, %v1254_v23  }
  0x4d   : > { %569 = vperm.xlu0 %1448, %v1255_v21  }
  0x50   : > { %586 = vperm.xlu1 %1450, %v580_v25  }
  0x51   : > { %511 = vrot.lane.b32.xlu0 %v1627_v22, %s1484_s25 }
  0x54   : > { %591 = vperm.xlu1 %1450, %v581_v27  }
  0x55   : > { %404 = vrot.lane.b32.xlu0 %v1635_v24, %s1483_s18 }
  0x58   : > { %513 = vrot.lane.b32.xlu1 %v1621_v20, %s1484_s25 }
  0x59   : > { %596 = vperm.xlu0 %1448, %v582_v26  }
  0x5c   : > { %406 = vrot.lane.b32.xlu1 %v1652_v29, %s1483_s18  ;;  %s1858_s18 = scalar_lea.vmem [#allocation3], %s1243_s14 }
  0x5d   : > { %515 = vrot.lane.b32.xlu0 %v1635_v24, %s1484_s25 }
  0x60   : > { %601 = vperm.xlu1 %1450, %v583_v31  }
  0x61   : > { %620 = vperm.xlu0 %1448, %v614_v28  }
  0x64   : > { %517 = vrot.lane.b32.xlu1 %v1652_v29, %s1484_s25  ;;  %s1247_s25 = sshll.u32 %s1550_s30, 7 }
  0x65   : > { %630 = vperm.xlu0 %1448, %v616_v30   ;;  %v1678_v46 = vstv %s1247_s25  ;;  %s376_s25 = scalar_lea.vmem %s1894_s8, %s1246_s27 }
  0x66   : > { %v1682_v49 = vadd.s32 %v1678_v46, %v1676_v45 }
  0x68   : > { %625 = vperm.xlu1 %1450, %v615_v32   ;;  %vm391_vm1 = vcmp.ge.s32.totalorder %v1682_v49, 300  ;;  %vm395_vm10 = vcmp.lt.s32.totalorder %v1682_v49, 600 }
  0x69   : > { %v1686_v54 = vsel %vm391_vm1, 1, %v1481_v5 }
  0x6a   : > { %v393_v57 = vmul.u32 300, %v1686_v54 }
  0x6c   : > { %635 = vperm.xlu1 %1450, %v617_v33   ;;  %v394_v59 = vsub.s32 %v1682_v49, %v393_v57 }
  0x6e   : > { %v435_v62 = vadd.s32 4294967295, %v394_v59  ;;  %v542_v0 = vadd.s32 1, %v394_v59  ;;  %v1485_v59 = vmov 0.0  }
  0x70   : > { %vm436_vm3 = vcmp.ge.s32.totalorder %v435_v62, 0  ;;  %vm437_vm4 = vcmp.lt.s32.totalorder %v435_v62, 300  ;;  %vm543_vm6 = vcmp.ge.s32.totalorder %v542_v0, 0  ;;  %vm544_vm7 = vcmp.lt.s32.totalorder %v542_v0, 300 }
  0x71   : > { %vm1700_vm8 = vmand %vm436_vm3, %vm437_vm4 }
  0x72   : > { %vm1708_vm9 = vmand %vm543_vm6, %vm544_vm7 }
  0x9c   : > { %v448_v35 = vpop.permute.xlu1 %447 }
  0xa0   : > { %v453_v36 = vpop.permute.xlu1 %452 }
  0xa4   : > { %v486_v38 = vpop.permute.xlu1 %485 }
  0xa5   : > { %v499_v23 = vmul.f32 %v486_v38, %v1621_v20  ;;  %v1734_v38 = vshrl.u32 %v386_v42, 7 }
  0xa7   : > { %v524_v37 = vpop.permute.xlu0 %523  ;;  %vm706_vm11 = vcmp.eq.s32.totalorder %v1734_v38, %v1686_v54 }
  0xa8   : > { %vm709_vm12 = vmand %vm706_vm11, %vm395_vm10 }
  0xa9   : > { %v528_v40 = vpop.permute.xlu1 %527  ;;  %v710_v54 = vsel %vm709_vm12, 1.0, %v1485_v59 }
  0xab   : > { %v1672_v39 = vpop.permute.xlu0 %531 }
  0xae   : > { %v424_v43 = vpop.permute.xlu1 %423 }
  0xb0   : > { %v414_v41 = vpop.permute.xlu0 %413 }
  0xb2   : > { %v555_v47 = vpop.permute.xlu1 %554 }
  0xb4   : > { %v419_v44 = vpop.permute.xlu0 %418 }
  0xb6   : > { %v560_v50 = vpop.permute.xlu1 %559 }
  0xb8   : > { %v481_v48 = vpop.permute.xlu0 %480 }
  0xb9   : > { %v498_v16 = vmul.f32 %v481_v48, %v1627_v22 }
  0xba   : > { %v463_v52 = vpop.permute.xlu1 %462 }
  0xbc   : > { %v429_v51 = vpop.permute.xlu0 %428 }
  0xbe   : > { %v1688_v55 = vpop.permute.xlu1 %495 }
  0xbf   : > { %v501_v42 = vmul.f32 %v1688_v55, %v1652_v29  ;;  %v711_v55 = vpack.c.bf16 %v710_v54, %v710_v54 }
  0xc0   : > { %v458_v53 = vpop.permute.xlu0 %457 }
  0xc1   : > { %v755_v0 = vsel %vm753_vm13, %v711_v55, 0 }
  0xc3   : > { %v1692_v60 = vpop.permute.xlu1 %535 }
  0xc4   : > { %v491_v56 = vpop.permute.xlu0 %490 }
  0xc7   : > { %v401_v63 = vpop.permute.xlu1 %400 }
  0xc8   : > { %v403_v58 = vpop.permute.xlu0 %402  ;;  %v431_v3 = vsel %vm408_vm2, %v414_v41, %v401_v63 }
  0xc9   : > { %v441_v6 = vsel %vm1700_vm8, %v431_v3, 0.0  ;;  %v432_v8 = vsel %vm408_vm2, %v419_v44, %v403_v58  ;;  %v1456_v3 = vld [vmem:[%s1892_s6 + $0x18] sm:$0xff]  }
  0xca   : > { %v465_v11 = vmul.f32 %v448_v35, %v441_v6  ;;  %v442_v12 = vsel %vm1700_vm8, %v432_v8, 0.0  ;;  %v1773_v6 = vmul.u32 300, %v902_v4  ;;  %v869_v8 = vadd.s32 %v1734_v38, %v1678_v46 }
  0xcb   : > { %v565_v2 = vpop.permute.xlu1 %564  ;;  %v466_v17 = vmul.f32 %v453_v36, %v442_v12 }
  0xcc   : > { %v1694_v61 = vpop.permute.xlu0 %569  ;;  %v502_v19 = vadd.f32 %v498_v16, %v465_v11  ;;  %vm904_vm1 = vcmp.lt.s32.totalorder %v869_v8, %v1773_v6  ;;  %vm936_vm4 = vcmp.lt.s32.totalorder %v869_v8, 600  ;;  %v1486_v11 = vmov 0.0|0.0  }
  0xcd   : > { %v503_v28 = vadd.f32 %v499_v23, %v466_v17  ;;  %1387 = vmatprep.subr.bf16.mxu1 %v1486_v11  ;;  %v1487_v16 = vmov 1.0|1.0  }
  0xcf   : > { %v587_v7 = vpop.permute.xlu1 %586 }
  0xd0   : > { %v512_v1 = vpop.permute.xlu0 %511 }
  0xd1   : > { %v538_v10 = vsel %vm519_vm5, %v524_v37, %v512_v1  ;;  %v1454_v1 = vld [vmem:[%s1892_s6 + $0x8] sm:$0xff]  }
  0xd2   : > { %v548_v13 = vsel %vm1708_vm9, %v538_v10, 0.0  ;;  %v856_v10 = vadd.s32 24, %v1734_v38 }
  0xd3   : > { %v592_v15 = vpop.permute.xlu1 %591  ;;  %v572_v18 = vmul.f32 %v555_v47, %v548_v13  ;;  %v500_v47 = vmul.f32 %v491_v56, %v1635_v24 }
  0xd4   : > { %v405_v5 = vpop.permute.xlu0 %404  ;;  %v872_v13 = vadd.s32 %v856_v10, %v1678_v46 }
  0xd5   : > { %v433_v30 = vsel %vm408_vm2, %v424_v43, %v405_v5  ;;  %v576_v31 = vadd.f32 %v572_v18, %v502_v19  ;;  %v1771_v5 = vmul.u32 300, %v1676_v45  ;;  %v855_v45 = vadd.s32 16, %v1734_v38 }
  0xd6   : > { %v443_v35 = vsel %vm1700_vm8, %v433_v30, 0.0  ;;  %v859_v19 = vadd.s32 48, %v1734_v38 }
  0xd7   : > { %v514_v21 = vpop.permute.xlu1 %513  ;;  %v604_v36 = vadd.f32 %v587_v7, %v576_v31  ;;  %v854_v7 = vadd.s32 8, %v1734_v38  ;;  %vm886_vm15 = vcmp.ge.s32.totalorder %v869_v8, %v1771_v5  ;;  %v871_v12 = vadd.s32 %v855_v45, %v1678_v46 }
  0xd8   : > { %v597_v14 = vpop.permute.xlu0 %596  ;;  %v539_v25 = vsel %vm519_vm5, %v528_v40, %v514_v21  ;;  %vm920_vm3 = vmand %vm886_vm15, %vm904_vm1  ;;  %vm889_vm11 = vcmp.ge.s32.totalorder %v872_v13, %v1771_v5  ;;  %v860_v21 = vadd.s32 56, %v1734_v38  ;;  %v875_v23 = vadd.s32 %v859_v19, %v1678_v46 }
  0xd9   : > { %v549_v27 = vsel %vm1708_vm9, %v539_v25, 0.0  ;;  %v870_v9 = vadd.s32 %v854_v7, %v1678_v46  ;;  %vm952_vm7 = vmand %vm920_vm3, %vm936_vm4  ;;  %vm888_vm10 = vcmp.ge.s32.totalorder %v871_v12, %v1771_v5  ;;  %vm906_vm12 = vcmp.lt.s32.totalorder %v871_v12, %v1773_v6 }
  0xda   : > { %v573_v32 = vmul.f32 %v560_v50, %v549_v27  ;;  %vm938_vm15 = vcmp.lt.s32.totalorder %v871_v12, 600  ;;  %v876_v25 = vadd.s32 %v860_v21, %v1678_v46  ;;  %v862_v27 = vadd.s32 72, %v1734_v38 }
  0xdb   : > { %v407_v22 = vpop.permute.xlu1 %406  ;;  %v863_v31 = vadd.s32 80, %v1734_v38 }
  0xdc   : > { %v516_v26 = vpop.permute.xlu0 %515  ;;  %v434_v20 = vsel %vm408_vm2, %v429_v51, %v407_v22  ;;  %v577_v34 = vadd.f32 %v573_v32, %v503_v28  ;;  %vm905_vm2 = vcmp.lt.s32.totalorder %v870_v9, %v1773_v6  ;;  %v878_v30 = vadd.s32 %v862_v27, %v1678_v46 }
  0xdd   : > { %v540_v33 = vsel %vm519_vm5, %v1672_v39, %v516_v26  ;;  %v444_v41 = vsel %vm1700_vm8, %v434_v20, 0.0  ;;  %v467_v39 = vmul.f32 %v458_v53, %v443_v35  ;;  %v861_v26 = vadd.s32 64, %v1734_v38 }
  0xde   : > { %v605_v37 = vadd.f32 %v592_v15, %v577_v34  ;;  %v550_v40 = vsel %vm1708_vm9, %v540_v33, 0.0  ;;  %v468_v50 = vmul.f32 %v463_v52, %v444_v41  ;;  %v858_v15 = vadd.s32 40, %v1734_v38 }
  0xdf   : > { %v602_v43 = vpop.permute.xlu1 %601  ;;  %v574_v48 = vmul.f32 %v565_v2, %v550_v40  ;;  %v504_v57 = vadd.f32 %v500_v47, %v467_v39  ;;  %v1455_v2 = vld [vmem:[%s1892_s6 + $0x10] sm:$0xff]   ;;  %v877_v28 = vadd.s32 %v861_v26, %v1678_v46  ;;  %v864_v32 = vadd.s32 88, %v1734_v38 }
  0xe0   : > { %v612_v44 = vpack.c.bf16 %v605_v37, %v604_v36  ;;  %v505_v56 = vadd.f32 %v501_v42, %v468_v50  ;;  %v874_v18 = vadd.s32 %v858_v15, %v1678_v46  ;;  %v879_v22 = vadd.s32 %v863_v31, %v1678_v46 }
  0xe1   : > { %v578_v52 = vadd.f32 %v574_v48, %v504_v57  ;;  %v880_v33 = vadd.s32 %v864_v32, %v1678_v46  ;;  %v865_v20 = vadd.s32 96, %v1734_v38  ;;  %v866_v34 = vadd.s32 104, %v1734_v38 }
  0xe2   : > { %1334 = vmatprep.subr.bf16.mxu0 %v612_v44  ;;  %v867_v37 = vadd.s32 112, %v1734_v38  ;;  %v868_v40 = vadd.s32 120, %v1734_v38 }
  0xe3   : > { %v518_v51 = vpop.permute.xlu1 %517  ;;  %1335 = vmatpush3.bf16.msra.mxu0 %v612_v44  ;;  %v606_v62 = vadd.f32 %v597_v14, %v578_v52  ;;  %v857_v14 = vadd.s32 32, %v1734_v38  ;;  %v881_v35 = vadd.s32 %v865_v20, %v1678_v46  ;;  %v882_v36 = vadd.s32 %v866_v34, %v1678_v46 }
  0xe4   : > { %v541_v53 = vsel %vm519_vm5, %v1692_v60, %v518_v51  ;;  %v1452_v60 = vld [vmem:[%s1890_s4 + $0x8] sm:$0xff]   ;;  %vm937_vm5 = vcmp.lt.s32.totalorder %v870_v9, 600  ;;  %v883_v41 = vadd.s32 %v867_v37, %v1678_v46 }
  0xe5   : > { %v551_v24 = vsel %vm1708_vm9, %v541_v53, 0.0  ;;  %v873_v17 = vadd.s32 %v857_v14, %v1678_v46 }
  0xe6   : > { %v575_v58 = vmul.f32 %v1694_v61, %v551_v24  ;;  %v1453_v61 = vld [vmem:[%s1892_s6] sm:$0xff]  }
  0xe7   : > { %vm890_vm3 = vcmp.ge.s32.totalorder %v873_v17, %v1771_v5  ;;  %vm908_vm4 = vcmp.lt.s32.totalorder %v873_v17, %v1773_v6  ;;  %v626_v44 = vpop.permute.xlu1 %625 }
  0xe8   : > { %v579_v49 = vadd.f32 %v575_v58, %v505_v56 }
  0xea   : > { %v607_v63 = vadd.f32 %v602_v43, %v579_v49  ;;  %v884_v43 = vadd.s32 %v868_v40, %v1678_v46  ;;  %v621_v46 = vpop.permute.xlu0 %620 }
  0xeb   : > { %v636_v42 = vpop.permute.xlu1 %635 }
  0xec   : > { %v613_v29 = vpack.c.bf16 %v607_v63, %v606_v62 }
  0xee   : > { %1336 = vmatprep.subr.bf16.mxu0 %v613_v29  ;;  %v631_v50 = vpop.permute.xlu0 %630 }
  0xef   : > { %1337 = vmatpush3.bf16.msra.mxu0 %v613_v29 }
  0xf0   : > { %1411 = vmatprep.subr.msk.bf16.mxu0 %vm753_vm13, %v711_v55  ;;  %vm907_vm13 = vcmp.lt.s32.totalorder %v872_v13, %v1773_v6 }
  0xf1   : > { %vm923_vm1 = vmand %vm889_vm11, %vm907_vm13  ;;  %vm941_vm11 = vcmp.lt.s32.totalorder %v874_v18, 600 }
  0xf2   : > { %1339 = vmatmul.mubr.msk.bf16.vlgmr.msra.gmra.mrb[0].mxu0 %vm648_vm0, %v1452_v60  ;;  %vm887_vm0 = vcmp.ge.s32.totalorder %v870_v9, %v1771_v5 }
  0xf3   : > { %1343 = vmatpush3.bf16.msra.mxu0 %v755_v0  ;;  %1344 = vmatprep.mubr.msk.bf16.mxu0 %vm740_vm14, %v1453_v61  ;;  %vm921_vm6 = vmand %vm887_vm0, %vm905_vm2  ;;  %vm939_vm0 = vcmp.lt.s32.totalorder %v872_v13, 600 }
  0xf4   : > { %vm953_vm8 = vmand %vm921_vm6, %vm937_vm5  ;;  %vm891_vm6 = vcmp.ge.s32.totalorder %v874_v18, %v1771_v5 }
  0xf5   : > { %vm1388_vm9 = vmpackc.low %vm953_vm8, %vm952_vm7  ;;  %vm909_vm7 = vcmp.lt.s32.totalorder %v874_v18, %v1773_v6 }
  0xf6   : > { %1389 = vmatpush3.bf16.msk.msra.mxu1 %vm1388_vm9, %v1487_v16  ;;  %vm955_vm5 = vmand %vm923_vm1, %vm939_vm0  ;;  %vm940_vm9 = vcmp.lt.s32.totalorder %v873_v17, 600  ;;  %vm893_vm1 = vcmp.ge.s32.totalorder %v876_v25, %v1771_v5 }
  0xf7   : > { %1390 = vmatprep.subr.bf16.mxu1 %v1486_v11 }
  0xfa   : > { %1345 = vmatmul.mubr.msk.bf16.vlgmr.msra.gmra.mrb[4].mxu0 %vm740_vm14, %v1454_v1 }
  0xfb   : > { %1348 = vmatprep.mubr.msk.bf16.mxu0 %vm740_vm14, %v1455_v2 }
 0x102   : > { %1349 = vmatmul.mubr.msk.bf16.gmra.mrb[8].mxu0 %vm740_vm14, %v1456_v3  ;;  %vm922_vm14 = vmand %vm888_vm10, %vm906_vm12 }
 0x103   : > { %vm954_vm2 = vmand %vm922_vm14, %vm938_vm15  ;;  %vm892_vm14 = vcmp.ge.s32.totalorder %v875_v23, %v1771_v5  ;;  %vm910_vm15 = vcmp.lt.s32.totalorder %v875_v23, %v1773_v6 }
 0x104   : > { %vm1391_vm8 = vmpackc.low %vm955_vm5, %vm954_vm2  ;;  %vm911_vm2 = vcmp.lt.s32.totalorder %v876_v25, %v1773_v6 }
 0x105   : > { %1392 = vmatpush3.bf16.msk.msra.mxu1 %vm1391_vm8, %v1487_v16  ;;  %vm924_vm10 = vmand %vm890_vm3, %vm908_vm4  ;;  %vm942_vm4 = vcmp.lt.s32.totalorder %v875_v23, 600 }
 0x106   : > { %1393 = vmatprep.subr.bf16.mxu1 %v1486_v11  ;;  %vm925_vm12 = vmand %vm891_vm6, %vm909_vm7  ;;  %vm943_vm6 = vcmp.lt.s32.totalorder %v876_v25, 600 }
 0x107   : > { %vm956_vm13 = vmand %vm924_vm10, %vm940_vm9  ;;  %vm894_vm9 = vcmp.ge.s32.totalorder %v877_v28, %v1771_v5  ;;  %vm912_vm10 = vcmp.lt.s32.totalorder %v877_v28, %v1773_v6 }
 0x108   : > { %vm957_vm0 = vmand %vm925_vm12, %vm941_vm11  ;;  %vm895_vm12 = vcmp.ge.s32.totalorder %v878_v30, %v1771_v5 }
 0x109   : > { %vm1394_vm3 = vmpackc.low %vm957_vm0, %vm956_vm13  ;;  %vm913_vm13 = vcmp.lt.s32.totalorder %v878_v30, %v1773_v6 }
 0x10a   : > { %1395 = vmatpush3.bf16.msk.msra.mxu1 %vm1394_vm3, %v1487_v16  ;;  %vm926_vm5 = vmand %vm892_vm14, %vm910_vm15  ;;  %vm944_vm15 = vcmp.lt.s32.totalorder %v877_v28, 600 }
 0x10b   : > { %1396 = vmatprep.subr.bf16.mxu1 %v1486_v11  ;;  %vm927_vm7 = vmand %vm893_vm1, %vm911_vm2  ;;  %vm945_vm1 = vcmp.lt.s32.totalorder %v878_v30, 600 }
 0x10c   : > { %vm958_vm8 = vmand %vm926_vm5, %vm942_vm4  ;;  %vm896_vm4 = vcmp.ge.s32.totalorder %v879_v22, %v1771_v5  ;;  %vm914_vm5 = vcmp.lt.s32.totalorder %v879_v22, %v1773_v6 }
 0x10d   : > { %vm959_vm11 = vmand %vm927_vm7, %vm943_vm6  ;;  %vm897_vm7 = vcmp.ge.s32.totalorder %v880_v33, %v1771_v5 }
 0x10e   : > { %vm1397_vm14 = vmpackc.low %vm959_vm11, %vm958_vm8  ;;  %vm915_vm8 = vcmp.lt.s32.totalorder %v880_v33, %v1773_v6  ;;  %vm1488_vm11 = vmmov 0  }
 0x10f   : > { %1398 = vmatpush3.bf16.msk.msra.mxu1 %vm1397_vm14, %v1487_v16  ;;  %vm928_vm0 = vmand %vm894_vm9, %vm912_vm10  ;;  %1384 = vmatprep.mubr.msk.f32.mxu1 %vm1488_vm11, %v1485_v59  ;;  %vm946_vm10 = vcmp.lt.s32.totalorder %v879_v22, 600 }
 0x110   : > { %1399 = vmatprep.subr.bf16.mxu1 %v1486_v11  ;;  %vm929_vm2 = vmand %vm895_vm12, %vm913_vm13  ;;  %vm947_vm13 = vcmp.lt.s32.totalorder %v880_v33, 600 }
 0x111   : > { %vm960_vm3 = vmand %vm928_vm0, %vm944_vm15  ;;  %vm898_vm0 = vcmp.ge.s32.totalorder %v881_v35, %v1771_v5 }
 0x112   : > { %vm961_vm6 = vmand %vm929_vm2, %vm945_vm1  ;;  %vm916_vm1 = vcmp.lt.s32.totalorder %v881_v35, %v1773_v6 }
 0x113   : > { %vm1400_vm9 = vmpackc.low %vm961_vm6, %vm960_vm3  ;;  %vm899_vm3 = vcmp.ge.s32.totalorder %v882_v36, %v1771_v5  ;;  %vm917_vm6 = vcmp.lt.s32.totalorder %v882_v36, %v1773_v6 }
 0x114   : > { %1401 = vmatpush3.bf16.msk.msra.mxu1 %vm1400_vm9, %v1487_v16  ;;  %vm930_vm12 = vmand %vm896_vm4, %vm914_vm5  ;;  %vm948_vm4 = vcmp.lt.s32.totalorder %v881_v35, 600 }
 0x115   : > { %1402 = vmatprep.subr.bf16.mxu1 %v1486_v11  ;;  %vm931_vm14 = vmand %vm897_vm7, %vm915_vm8  ;;  %vm949_vm7 = vcmp.lt.s32.totalorder %v882_v36, 600 }
 0x116   : > { %vm962_vm15 = vmand %vm930_vm12, %vm946_vm10  ;;  %vm900_vm10 = vcmp.ge.s32.totalorder %v883_v41, %v1771_v5  ;;  %vm918_vm12 = vcmp.lt.s32.totalorder %v883_v41, %v1773_v6 }
 0x117   : > { %vm963_vm2 = vmand %vm931_vm14, %vm947_vm13  ;;  %vm901_vm14 = vcmp.ge.s32.totalorder %v884_v43, %v1771_v5 }
 0x118   : > { %vm1403_vm11 = vmpackc.low %vm963_vm2, %vm962_vm15  ;;  %vm919_vm15 = vcmp.lt.s32.totalorder %v884_v43, %v1773_v6 }
 0x119   : > { %1404 = vmatpush3.bf16.msk.msra.mxu1 %vm1403_vm11, %v1487_v16  ;;  %vm932_vm5 = vmand %vm898_vm0, %vm916_vm1  ;;  %vm950_vm11 = vcmp.lt.s32.totalorder %v883_v41, 600  ;;  %vm951_vm1 = vcmp.lt.s32.totalorder %v884_v43, 600 }
 0x11a   : > { %1405 = vmatprep.subr.bf16.mxu1 %v1486_v11  ;;  %vm933_vm8 = vmand %vm899_vm3, %vm917_vm6 }
 0x11b   : > { %vm964_vm9 = vmand %vm932_vm5, %vm948_vm4 }
 0x11c   : > { %vm965_vm13 = vmand %vm933_vm8, %vm949_vm7  ;;  %vm852_vm7 = vcmask 1040384   ;;  %vm1054_vm8 = vcmask 58368  }
 0x11d   : > { %vm1406_vm2 = vmpackc.low %vm965_vm13, %vm964_vm9 }
 0x11e   : > { %1407 = vmatpush3.bf16.msk.msra.mxu1 %vm1406_vm2, %v1487_v16  ;;  %vm934_vm0 = vmand %vm900_vm10, %vm918_vm12 }
 0x11f   : > { %1408 = vmatprep.subr.bf16.mxu1 %v1486_v11  ;;  %vm935_vm3 = vmand %vm901_vm14, %vm919_vm15 }
 0x120   : > { %vm966_vm6 = vmand %vm934_vm0, %vm950_vm11 }
 0x121   : > { %vm967_vm4 = vmand %vm935_vm3, %vm951_vm1 }
 0x122   : > { %vm1409_vm5 = vmpackc.low %vm967_vm4, %vm966_vm6 }
 0x123   : > { %1410 = vmatpush3.bf16.msk.msra.mxu1 %vm1409_vm5, %v1487_v16 }
 0x1c5   : > { %v1340_v38 = vpop.f32.mrb[0].mxu0 }
 0x1c6   : > { %v689_v39 = vpop.f32.mrb[1].mxu0  ;;  %v698_v51 = vadd.f32 %v1340_v38, %v631_v50 }
 0x1c7   : > { %v1341_v47 = vpop.f32.mrb[2].mxu0  ;;  %v690_v57 = vadd.f32 %v689_v39, %v621_v46 }
 0x1c8   : > { %v692_v48 = vpop.f32.mrb[3].mxu0  ;;  %v701_v24 = vadd.f32 %v1341_v47, %v636_v42 }
 0x1c9   : > { %v693_v58 = vadd.f32 %v692_v48, %v626_v44 }
 0x1cd   : > { %v1346_v53 = vpop.f32.mrb[4].mxu0 }
 0x1ce   : > { %v824_v52 = vmul.f32 %v1346_v53, %v698_v51  ;;  %v791_v56 = vpop.f32.mrb[5].mxu0 }
 0x1cf   : > { %v822_v49 = vmul.f32 %v791_v56, %v690_v57  ;;  %v1347_v59 = vpop.f32.mrb[6].mxu0 }
 0x1d0   : > { %v825_v54 = vmul.f32 %v1347_v59, %v701_v24  ;;  %v794_v62 = vpop.f32.mrb[7].mxu0 }
 0x1d1   : > { %v823_v63 = vmul.f32 %v794_v62, %v693_v58 }
 0x1d5   : > { %v1350_v29 = vpop.f32.mrb[8].mxu0 }
 0x1d6   : > { %v828_v55 = vadd.f32 %v1350_v29, %v824_v52  ;;  %v807_v60 = vpop.f32.mrb[9].mxu0 }
 0x1d7   : > { %v826_v61 = vadd.f32 %v822_v49, %v807_v60  ;;  %v1351_v0 = vpop.f32.mrb[10].mxu0 }
 0x1d8   : > { %v829_v1 = vadd.f32 %v1351_v0, %v825_v54  ;;  %v810_v2 = vpop.f32.mrb[11].mxu0  ;;  %v841_v9 = vmul.f32 %v828_v55, %v828_v55 }
 0x1d9   : > { %v827_v3 = vadd.f32 %v823_v63, %v810_v2  ;;  %v839_v5 = vmul.f32 %v826_v61, %v826_v61 }
 0x1da   : > { %v1305_v4 = vpack.c.bf16 %v829_v1, %v828_v55  ;;  %v842_v11 = vmul.f32 %v829_v1, %v829_v1 }
 0x1db   : > { %v830_v6 = vadd.f32 %v827_v3, %v826_v61  ;;  %v840_v7 = vmul.f32 %v827_v3, %v827_v3  ;;  %v1300_v8 = vpack.c.bf16 %v827_v3, %v826_v61 }
 0x1dc   : > { %1307 = vst [vmem:[%s1858_s18 + $0x8] sm:$0xff] %v1305_v4  }
 0x1dd   : > { %v831_v45 = vadd.f32 %v830_v6, %v828_v55  ;;  %v843_v10 = vadd.f32 %v840_v7, %v839_v5  ;;  %1301 = vst [vmem:[%s1858_s18] sm:$0xff] %v1300_v8  }
 0x1df   : > { %v832_v12 = vadd.f32 %v831_v45, %v829_v1  ;;  %v844_v13 = vadd.f32 %v843_v10, %v841_v9 }
 0x1e1   : > { %v833_v14 = vrot.slane %v832_v12, 4  ;;  %v845_v15 = vadd.f32 %v844_v13, %v842_v11 }
 0x1e3   : > { %v834_v16 = vadd.f32 %v833_v14, %v832_v12  ;;  %v846_v17 = vrot.slane %v845_v15, 4  ;;  %v1108_v34 = vld [vmem:[%s1858_s18 + $0x8] sm:$0xf] (%p1565_p5)  ;;  %v1110_v35 = vld [vmem:[%s1858_s18 + $0xc] sm:$0xf] (%p1565_p5) }
 0x1e4   : > { %v1104_v33 = vld [vmem:[%s1858_s18] sm:$0xf] (%p1565_p5)  ;;  %v1106_v20 = vld [vmem:[%s1858_s18 + $0x4] sm:$0xf] (%p1565_p5)  ;;  %1109 = vst [vmem:[%s1088_s19 + $0x28] sm:$0xf] (%p1565_p5), %v1108_v34 }
 0x1e5   : > { %v835_v18 = vrot.slane %v834_v16, 2  ;;  %v847_v19 = vadd.f32 %v846_v17, %v845_v15  ;;  %1105 = vst [vmem:[%s1088_s19] sm:$0xf] (%p1565_p5), %v1104_v33  ;;  %1107 = vst [vmem:[%s1088_s19 + $0x14] sm:$0xf] (%p1565_p5), %v1106_v20 }
 0x1e6   : > { %1111 = vst [vmem:[%s1088_s19 + $0x3c] sm:$0xf] (%p1565_p5), %v1110_v35 }
 0x1e7   : > { %v836_v21 = vadd.f32 %v835_v18, %v834_v16  ;;  %v848_v23 = vrot.slane %v847_v19, 2 }
 0x1e9   : > { %v837_v25 = vrot.slane %v836_v21, 1  ;;  %v849_v26 = vadd.f32 %v848_v23, %v847_v19 }
 0x1eb   : > { %v850_v27 = vrot.slane %v849_v26, 1  ;;  %v838_v28 = vadd.f32 %v837_v25, %v836_v21 }
 0x1ed   : > { %v851_v30 = vadd.f32 %v850_v27, %v849_v26 }
 0x1ef   : > { %v853_v31 = vsel %vm852_vm7, %v838_v28, %v851_v30 }
 0x1f0   : > { %1385 = vmatmul.mubr.f32.vlgmr.msra.gmra.mrb[0].mxu1 %v853_v31 }
 0x2be   : > { %1086 = sbr.rel (!%p1565_p5) target bundleno = 709 (0x2c5), region = 90 }
 0x2c3   : > { %v1050_v32 = vpop.f32.mrb[0].mxu1 }
 0x2c4   : > { %1055 = vst.msk [vmem:[%s376_s25] sm:$0x3] %vm1054_vm8, %v1050_v32  ;;  %v1386_v22 = vpop.f32.mrb[1].mxu1 }
 0x2c5 PF: > { %p16_p11 = scmp.ge.s32.totalorder %s1553_s9, 7   ;;  %s1900_s27 = smov %s1475_s28 }
 0x2c6   : > { %s1901_s28 = smov %s1563_s12  ;;  %s1902_s29 = smov %s1553_s9 }
 0x2c7   :  { %18 = sbr.rel (!%p16_p11) target bundleno = 2 (0x2), region = 179 }

</bundles_post_ra>
